<compile_context>
chip_gen: v7x
topology: tpu7x:2x2x1
jax: 0.10.0
libtpu: 0.0.40
codegen_flags: <defaults>
</compile_context>

<pallas_src>
from functools import partial

import jax
import jax.numpy as jnp
from jax.experimental import pallas as pl
from jax.experimental.pallas import tpu as pltpu

NUM_GROUPS = 8
EPS = 1e-6


def _silu(x):
    # x * sigmoid(x); 1/(1+exp(-x)) with the reciprocal on the EUP (approx vrcp)
    # keeps the divide off the VALU, which is the saturating slot in this kernel.
    return x * pl.reciprocal(1.0 + jnp.exp(-x), approx=True)


def _group_norm(h, gamma, beta, bias=None, num_groups=NUM_GROUPS, eps=EPS):
    """GroupNorm of (h + bias) for one sample in (C, L) layout, all f32.

    `bias` (per-channel, e.g. the preceding conv's bias) is folded into the
    statistics so the biased activation never has to be materialized.
    Stats use lane reductions over L followed by a group reduction on the tiny
    (C, 1) per-channel sums -- no full-slab reshape/relayout.  The affine is
    fused into a single per-channel scale/shift => one multiply-add slab pass.
    """
    C, L = h.shape
    cg = C // num_groups
    n = jnp.float32(cg * L)
    g3 = lambda v: v.reshape(num_groups, cg, 1)          # tiny-vector group view

    ch_sum = jnp.sum(h, axis=1, keepdims=True)                        # (C, 1)
    if bias is not None:
        ch_sum = ch_sum + jnp.float32(L) * bias
    mean_g = jnp.sum(g3(ch_sum), axis=1, keepdims=True) / n           # (G, 1, 1)
    # effective per-channel center of the *stored* h (bias folded in)
    mu_g = mean_g - g3(bias) if bias is not None else mean_g
    mu = jnp.broadcast_to(mu_g, (num_groups, cg, 1)).reshape(C, 1)    # (C, 1)

    d = h - mu                                                        # (C, L)
    ch_ss = jnp.sum(d * d, axis=1, keepdims=True)                     # (C, 1)
    var_g = jnp.sum(g3(ch_ss), axis=1, keepdims=True) / n             # (G, 1, 1)
    rstd = jnp.broadcast_to(jax.lax.rsqrt(var_g + eps),
                            (num_groups, cg, 1)).reshape(C, 1)        # (C, 1)

    scale = rstd * gamma                                              # (C, 1)
    shift = beta - mu * scale                                         # (C, 1)
    return h * scale + shift                                          # 1 fused pass


def resnet_block_kernel(x_ref,
                        g1_ref, b1_ref, w1_ref, bc1_ref,
                        g2_ref, b2_ref, w2_ref, bres_ref,
                        *rest, has_shortcut):
    if has_shortcut:
        ws_ref, o_ref = rest
    else:
        (o_ref,) = rest

    bt = x_ref.shape[0]
    for bi in range(bt):                       # static unroll over batch tile
        x = x_ref[bi].astype(jnp.float32)      # (Cin, L)

        # norm1 -> SiLU (f32 stats, one fused scale/shift pass)
        h = _silu(_group_norm(x, g1_ref[...], b1_ref[...]))

        # early shortcut: f32 x dies here; MXU work overlaps GN2/SiLU VPU work.
        if has_shortcut:
            xs = jnp.dot(ws_ref[...], x.astype(jnp.bfloat16),
                         preferred_element_type=jnp.float32)          # (Cout, L)
        else:
            xs = x

        # conv1 (1x1 == matmul); its bias is folded into the GN2 stats below.
        h = jnp.dot(w1_ref[...], h.astype(jnp.bfloat16),
                    preferred_element_type=jnp.float32)               # (Cout, L)

        # norm2 (of h + bc1) -> SiLU -> dropout (eval identity) -> conv2
        h = _silu(_group_norm(h, g2_ref[...], b2_ref[...], bias=bc1_ref[...]))
        h = jnp.dot(w2_ref[...], h.astype(jnp.bfloat16),
                    preferred_element_type=jnp.float32)               # (Cout, L)

        # residual add + single combined bias (conv2 bias + shortcut bias)
        o_ref[bi] = (xs + h + bres_ref[...]).astype(o_ref.dtype)


def _vmem_limit_bytes():
    try:
        cap = int(pltpu.get_tpu_info().vmem_capacity_bytes)
    except Exception:
        cap = 128 * 1024 * 1024
    # ~75% of physical VMEM: 96 MiB on v5e/v6e (128 MiB), 48 MiB on v7x (64 MiB).
    return (cap * 3) // 4


def _pick_batch_tile(B, Cin, Cout, L, vmem_limit):
    """Samples per grid step: amortize per-step overhead, keep >= 2 grid steps
    (megacore / DMA pipelining) and stay well inside the VMEM budget."""
    per_sample = (2 * Cin + 4 * Cout) * L * 4     # rough live f32 bytes / sample
    budget = vmem_limit // 3                       # headroom: weights + stream bufs
    for bt in (8, 4, 2):
        if B % bt == 0 and B // bt >= 2 and bt * per_sample <= budget:
            return bt
    return 1


def resnet_block(x_ncl, params):
    """x_ncl: (B, Cin, L) float (PyTorch Conv1d layout). Returns (B, Cout, L)."""
    B, Cin, L = x_ncl.shape
    Cout = params["w1"].shape[0]
    assert Cin % NUM_GROUPS == 0 and Cout % NUM_GROUPS == 0, \
        "GroupNorm(8) requires channel counts divisible by 8"
    has_shortcut = Cin != Cout

    vmem_limit = _vmem_limit_bytes()
    bt = _pick_batch_tile(B, Cin, Cout, L, vmem_limit)

    # bf16 weight copies for the MXU; biases / affine params stay f32 (VPU adds).
    w1 = params["w1"].astype(jnp.bfloat16)
    w2 = params["w2"].astype(jnp.bfloat16)
    # Combined final bias: conv2 bias (+ nin_shortcut bias) added once at the end.
    bres = params["bc2"] + (params["bs"] if has_shortcut else 0.0)

    # Very large streamed blocks: drop to single buffering so the step still fits
    # (v7x 64 MiB).  TODO(synk): proper L-tiling (two-pass GroupNorm) for huge C*L.
    io_bytes = bt * (Cin + Cout) * L * x_ncl.dtype.itemsize
    io_mode = pl.Buffered(1) if 2 * io_bytes > vmem_limit // 4 else None

    def io_spec(shape, index_map):
        if io_mode is None:
            return pl.BlockSpec(shape, index_map)
        return pl.BlockSpec(shape, index_map, pipeline_mode=io_mode)

    full = lambda shape: pl.BlockSpec(shape, lambda b: (0,) * len(shape))

    in_specs = [
        io_spec((bt, Cin, L), lambda b: (b, 0, 0)),   # x (batch-tile slab)
        full((Cin, 1)),                               # gamma1
        full((Cin, 1)),                               # beta1
        full((Cout, Cin)),                            # w1 (bf16)
        full((Cout, 1)),                              # conv1 bias (folded into GN2)
        full((Cout, 1)),                              # gamma2
        full((Cout, 1)),                              # beta2
        full((Cout, Cout)),                           # w2 (bf16)
        full((Cout, 1)),                              # combined bias bc2 (+ bs)
    ]
    args = [x_ncl, params["g1"], params["b1"], w1, params["bc1"],
            params["g2"], params["b2"], w2, bres]
    if has_shortcut:
        in_specs.append(full((Cout, Cin)))            # nin_shortcut weight (bf16)
        args.append(params["ws"].astype(jnp.bfloat16))

    grid_spec = pltpu.PrefetchScalarGridSpec(
        num_scalar_prefetch=0,
        grid=(B // bt,),
        in_specs=in_specs,
        out_specs=io_spec((bt, Cout, L), lambda b: (b, 0, 0)),
    )
    return pl.pallas_call(
        partial(resnet_block_kernel, has_shortcut=has_shortcut),
        out_shape=jax.ShapeDtypeStruct((B, Cout, L), x_ncl.dtype),
        grid_spec=grid_spec,
        compiler_params=pltpu.CompilerParams(
            dimension_semantics=("parallel",),
            vmem_limit_bytes=vmem_limit),
    )(*args)


def resnet_block_ref(x, params, has_shortcut):
    """Pure-JAX f32 reference (mirrors the PyTorch forward in eval mode)."""
    def gn(h, gamma, beta):
        B, C, L = h.shape
        hg = h.reshape(B, NUM_GROUPS, C // NUM_GROUPS, L)
        mean = hg.mean(axis=(2, 3), keepdims=True)
        var = ((hg - mean) ** 2).mean(axis=(2, 3), keepdims=True)
        hn = ((hg - mean) / jnp.sqrt(var + EPS)).reshape(B, C, L)
        return hn * gamma[None] + beta[None]

    h = gn(x, params["g1"], params["b1"])
    h = h * jax.nn.sigmoid(h)
    h = jnp.einsum("oc,bcl->bol", params["w1"], h) + params["bc1"][None]
    h = gn(h, params["g2"], params["b2"])
    h = h * jax.nn.sigmoid(h)
    h = jnp.einsum("oc,bcl->bol", params["w2"], h) + params["bc2"][None]
    if has_shortcut:
        x = jnp.einsum("oc,bcl->bol", params["ws"], x) + params["bs"][None]
    return x + h


def init_params(key, in_channels, out_channels):
    ks = jax.random.split(key, 6)
    s1 = 1.0 / jnp.sqrt(in_channels)
    s2 = 1.0 / jnp.sqrt(out_channels)
    return {
        "g1": jnp.ones((in_channels, 1), jnp.float32),
        "b1": jnp.zeros((in_channels, 1), jnp.float32),
        "w1": jax.random.normal(ks[0], (out_channels, in_channels), jnp.float32) * s1,
        "bc1": jax.random.normal(ks[1], (out_channels, 1), jnp.float32) * s1,
        "g2": jnp.ones((out_channels, 1), jnp.float32),
        "b2": jnp.zeros((out_channels, 1), jnp.float32),
        "w2": jax.random.normal(ks[2], (out_channels, out_channels), jnp.float32) * s2,
        "bc2": jax.random.normal(ks[3], (out_channels, 1), jnp.float32) * s2,
        "ws": jax.random.normal(ks[4], (out_channels, in_channels), jnp.float32) * s1,
        "bs": jax.random.normal(ks[5], (out_channels, 1), jnp.float32) * s1,
    }


if __name__ == "__main__":
    B, Cin, Cout, L = 2, 32, 64, 128       # PyTorch layout (B, C, L); L lane-dense
    key = jax.random.PRNGKey(0)
    kx, kp = jax.random.split(key)
    x = jax.random.normal(kx, (B, Cin, L), jnp.float32)
    params = init_params(kp, Cin, Cout)

    out = jax.block_until_ready(resnet_block(x, params))
    ref = jax.block_until_ready(
        resnet_block_ref(x.astype(jnp.float32), params, has_shortcut=(Cin != Cout)))

    assert out.shape == (B, Cout, L), out.shape
    # bf16 MXU operands + approx-EUP sigmoid vs f32 reference -> relaxed tolerance.
    max_err = float(jnp.max(jnp.abs(out - ref)))
    assert jnp.allclose(out, ref, atol=5e-2, rtol=5e-2), max_err
    print("KERNEL_OK")
</pallas_src>

<mosaic_0001>
module attributes {stable_mosaic.version = 11 : i64} {
  func.func @resnet_block_kernel(%arg0: i32, %arg1: memref<1x32x128xf32, #tpu.memory_space<vmem>>, %arg2: memref<32x1xf32, #tpu.memory_space<vmem>>, %arg3: memref<32x1xf32, #tpu.memory_space<vmem>>, %arg4: memref<64x32xbf16, #tpu.memory_space<vmem>>, %arg5: memref<64x1xf32, #tpu.memory_space<vmem>>, %arg6: memref<64x1xf32, #tpu.memory_space<vmem>>, %arg7: memref<64x1xf32, #tpu.memory_space<vmem>>, %arg8: memref<64x64xbf16, #tpu.memory_space<vmem>>, %arg9: memref<64x1xf32, #tpu.memory_space<vmem>>, %arg10: memref<64x32xbf16, #tpu.memory_space<vmem>>, %arg11: memref<1x64x128xf32, #tpu.memory_space<vmem>>) attributes {dimension_semantics = [#tpu.dimension_semantics<parallel>], iteration_bounds = array<i64: 2>, scalar_prefetch = 0 : i64, scratch_operands = 0 : i64, tpu.core_type = #tpu.core_type<tc>, window_params = [{transform_indices = @transform_0, window_bounds = array<i64: 1, 32, 128>}, {pipeline_mode = #tpu.pipeline_mode<synchronous>, transform_indices = @transform_1, window_bounds = array<i64: 32, 1>}, {pipeline_mode = #tpu.pipeline_mode<synchronous>, transform_indices = @transform_2, window_bounds = array<i64: 32, 1>}, {pipeline_mode = #tpu.pipeline_mode<synchronous>, transform_indices = @transform_3, window_bounds = array<i64: 64, 32>}, {pipeline_mode = #tpu.pipeline_mode<synchronous>, transform_indices = @transform_4, window_bounds = array<i64: 64, 1>}, {pipeline_mode = #tpu.pipeline_mode<synchronous>, transform_indices = @transform_5, window_bounds = array<i64: 64, 1>}, {pipeline_mode = #tpu.pipeline_mode<synchronous>, transform_indices = @transform_6, window_bounds = array<i64: 64, 1>}, {pipeline_mode = #tpu.pipeline_mode<synchronous>, transform_indices = @transform_7, window_bounds = array<i64: 64, 64>}, {pipeline_mode = #tpu.pipeline_mode<synchronous>, transform_indices = @transform_8, window_bounds = array<i64: 64, 1>}, {pipeline_mode = #tpu.pipeline_mode<synchronous>, transform_indices = @transform_9, window_bounds = array<i64: 64, 32>}, {transform_indices = @transform_10, window_bounds = array<i64: 1, 64, 128>}]} {
    %c0 = arith.constant 0 : index
    %c0_0 = arith.constant 0 : index
    %c0_1 = arith.constant 0 : index
    %0 = vector.load %arg1[%c0, %c0_0, %c0_1] : memref<1x32x128xf32, #tpu.memory_space<vmem>>, vector<1x32x128xf32>
    %1 = vector.shape_cast %0 : vector<1x32x128xf32> to vector<32x128xf32>
    %c0_2 = arith.constant 0 : index
    %c0_3 = arith.constant 0 : index
    %2 = vector.load %arg2[%c0_2, %c0_3] : memref<32x1xf32, #tpu.memory_space<vmem>>, vector<32x1xf32>
    %c0_4 = arith.constant 0 : index
    %c0_5 = arith.constant 0 : index
    %3 = vector.load %arg3[%c0_4, %c0_5] : memref<32x1xf32, #tpu.memory_space<vmem>>, vector<32x1xf32>
    %cst = arith.constant dense<0.000000e+00> : vector<32xf32>
    %4 = vector.multi_reduction <add>, %1, %cst [1] : vector<32x128xf32> to vector<32xf32>
    %5 = vector.shape_cast %4 : vector<32xf32> to vector<32x1xf32>
    %6 = vector.shape_cast %5 : vector<32x1xf32> to vector<8x4x1xf32>
    %cst_6 = arith.constant dense<0.000000e+00> : vector<8x1xf32>
    %7 = vector.multi_reduction <add>, %6, %cst_6 [1] : vector<8x4x1xf32> to vector<8x1xf32>
    %8 = vector.shape_cast %7 : vector<8x1xf32> to vector<8x1x1xf32>
    %cst_7 = arith.constant 5.120000e+02 : f32
    %9 = vector.broadcast %cst_7 : f32 to vector<8x1x1xf32>
    %10 = arith.divf %8, %9 : vector<8x1x1xf32>
    %11 = vector.shape_cast %10 : vector<8x1x1xf32> to vector<8x1x1xf32>
    %12 = vector.broadcast %11 : vector<8x1x1xf32> to vector<8x4x1xf32>
    %13 = vector.shape_cast %12 : vector<8x4x1xf32> to vector<32x1xf32>
    %14 = vector.broadcast %13 : vector<32x1xf32> to vector<32x128xf32>
    %15 = arith.subf %1, %14 : vector<32x128xf32>
    %16 = arith.mulf %15, %15 : vector<32x128xf32>
    %cst_8 = arith.constant dense<0.000000e+00> : vector<32xf32>
    %17 = vector.multi_reduction <add>, %16, %cst_8 [1] : vector<32x128xf32> to vector<32xf32>
    %18 = vector.shape_cast %17 : vector<32xf32> to vector<32x1xf32>
    %19 = vector.shape_cast %18 : vector<32x1xf32> to vector<8x4x1xf32>
    %cst_9 = arith.constant dense<0.000000e+00> : vector<8x1xf32>
    %20 = vector.multi_reduction <add>, %19, %cst_9 [1] : vector<8x4x1xf32> to vector<8x1xf32>
    %21 = vector.shape_cast %20 : vector<8x1xf32> to vector<8x1x1xf32>
    %cst_10 = arith.constant 5.120000e+02 : f32
    %22 = vector.broadcast %cst_10 : f32 to vector<8x1x1xf32>
    %23 = arith.divf %21, %22 : vector<8x1x1xf32>
    %cst_11 = arith.constant 9.99999997E-7 : f32
    %24 = vector.broadcast %cst_11 : f32 to vector<8x1x1xf32>
    %25 = arith.addf %23, %24 : vector<8x1x1xf32>
    %26 = math.rsqrt %25 : vector<8x1x1xf32>
    %27 = vector.shape_cast %26 : vector<8x1x1xf32> to vector<8x1x1xf32>
    %28 = vector.broadcast %27 : vector<8x1x1xf32> to vector<8x4x1xf32>
    %29 = vector.shape_cast %28 : vector<8x4x1xf32> to vector<32x1xf32>
    %30 = arith.mulf %29, %2 : vector<32x1xf32>
    %31 = arith.mulf %13, %30 : vector<32x1xf32>
    %32 = arith.subf %3, %31 : vector<32x1xf32>
    %33 = vector.broadcast %30 : vector<32x1xf32> to vector<32x128xf32>
    %34 = arith.mulf %1, %33 : vector<32x128xf32>
    %35 = vector.broadcast %32 : vector<32x1xf32> to vector<32x128xf32>
    %36 = arith.addf %34, %35 : vector<32x128xf32>
    %cst_12 = arith.constant 0.000000e+00 : f32
    %37 = vector.broadcast %cst_12 : f32 to vector<32x128xf32>
    %38 = arith.subf %37, %36 : vector<32x128xf32>
    %39 = math.exp %38 : vector<32x128xf32>
    %cst_13 = arith.constant 1.000000e+00 : f32
    %40 = vector.broadcast %cst_13 : f32 to vector<32x128xf32>
    %41 = arith.addf %40, %39 : vector<32x128xf32>
    %42 = tpu.reciprocal %41 {approx = true} : vector<32x128xf32> -> vector<32x128xf32>
    %43 = arith.mulf %36, %42 : vector<32x128xf32>
    %c0_14 = arith.constant 0 : index
    %c0_15 = arith.constant 0 : index
    %44 = vector.load %arg10[%c0_14, %c0_15] : memref<64x32xbf16, #tpu.memory_space<vmem>>, vector<64x32xbf16>
    %45 = arith.truncf %1 : vector<32x128xf32> to vector<32x128xbf16>
    %cst_16 = arith.constant dense<0.000000e+00> : vector<64x128xf32>
    %46 = tpu.matmul %44, %45, %cst_16 {dimension_numbers = #tpu.dot_dimension_numbers<[1], [0], [0], [1], [0, 0, 1, 1], [], []>} : vector<64x32xbf16>, vector<32x128xbf16>, vector<64x128xf32> -> vector<64x128xf32>
    %c0_17 = arith.constant 0 : index
    %c0_18 = arith.constant 0 : index
    %47 = vector.load %arg4[%c0_17, %c0_18] : memref<64x32xbf16, #tpu.memory_space<vmem>>, vector<64x32xbf16>
    %48 = arith.truncf %43 : vector<32x128xf32> to vector<32x128xbf16>
    %cst_19 = arith.constant dense<0.000000e+00> : vector<64x128xf32>
    %49 = tpu.matmul %47, %48, %cst_19 {dimension_numbers = #tpu.dot_dimension_numbers<[1], [0], [0], [1], [0, 0, 1, 1], [], []>} : vector<64x32xbf16>, vector<32x128xbf16>, vector<64x128xf32> -> vector<64x128xf32>
    %c0_20 = arith.constant 0 : index
    %c0_21 = arith.constant 0 : index
    %50 = vector.load %arg6[%c0_20, %c0_21] : memref<64x1xf32, #tpu.memory_space<vmem>>, vector<64x1xf32>
    %c0_22 = arith.constant 0 : index
    %c0_23 = arith.constant 0 : index
    %51 = vector.load %arg7[%c0_22, %c0_23] : memref<64x1xf32, #tpu.memory_space<vmem>>, vector<64x1xf32>
    %c0_24 = arith.constant 0 : index
    %c0_25 = arith.constant 0 : index
    %52 = vector.load %arg5[%c0_24, %c0_25] : memref<64x1xf32, #tpu.memory_space<vmem>>, vector<64x1xf32>
    %cst_26 = arith.constant dense<0.000000e+00> : vector<64xf32>
    %53 = vector.multi_reduction <add>, %49, %cst_26 [1] : vector<64x128xf32> to vector<64xf32>
    %54 = vector.shape_cast %53 : vector<64xf32> to vector<64x1xf32>
    %cst_27 = arith.constant 1.280000e+02 : f32
    %55 = vector.broadcast %cst_27 : f32 to vector<64x1xf32>
    %56 = arith.mulf %55, %52 : vector<64x1xf32>
    %57 = arith.addf %54, %56 : vector<64x1xf32>
    %58 = vector.shape_cast %57 : vector<64x1xf32> to vector<8x8x1xf32>
    %cst_28 = arith.constant dense<0.000000e+00> : vector<8x1xf32>
    %59 = vector.multi_reduction <add>, %58, %cst_28 [1] : vector<8x8x1xf32> to vector<8x1xf32>
    %60 = vector.shape_cast %59 : vector<8x1xf32> to vector<8x1x1xf32>
    %cst_29 = arith.constant 1.024000e+03 : f32
    %61 = vector.broadcast %cst_29 : f32 to vector<8x1x1xf32>
    %62 = arith.divf %60, %61 : vector<8x1x1xf32>
    %63 = vector.shape_cast %52 : vector<64x1xf32> to vector<8x8x1xf32>
    %64 = vector.broadcast %62 : vector<8x1x1xf32> to vector<8x8x1xf32>
    %65 = arith.subf %64, %63 : vector<8x8x1xf32>
    %66 = vector.shape_cast %65 : vector<8x8x1xf32> to vector<64x1xf32>
    %67 = vector.broadcast %66 : vector<64x1xf32> to vector<64x128xf32>
    %68 = arith.subf %49, %67 : vector<64x128xf32>
    %69 = arith.mulf %68, %68 : vector<64x128xf32>
    %cst_30 = arith.constant dense<0.000000e+00> : vector<64xf32>
    %70 = vector.multi_reduction <add>, %69, %cst_30 [1] : vector<64x128xf32> to vector<64xf32>
    %71 = vector.shape_cast %70 : vector<64xf32> to vector<64x1xf32>
    %72 = vector.shape_cast %71 : vector<64x1xf32> to vector<8x8x1xf32>
    %cst_31 = arith.constant dense<0.000000e+00> : vector<8x1xf32>
    %73 = vector.multi_reduction <add>, %72, %cst_31 [1] : vector<8x8x1xf32> to vector<8x1xf32>
    %74 = vector.shape_cast %73 : vector<8x1xf32> to vector<8x1x1xf32>
    %cst_32 = arith.constant 1.024000e+03 : f32
    %75 = vector.broadcast %cst_32 : f32 to vector<8x1x1xf32>
    %76 = arith.divf %74, %75 : vector<8x1x1xf32>
    %cst_33 = arith.constant 9.99999997E-7 : f32
    %77 = vector.broadcast %cst_33 : f32 to vector<8x1x1xf32>
    %78 = arith.addf %76, %77 : vector<8x1x1xf32>
    %79 = math.rsqrt %78 : vector<8x1x1xf32>
    %80 = vector.shape_cast %79 : vector<8x1x1xf32> to vector<8x1x1xf32>
    %81 = vector.broadcast %80 : vector<8x1x1xf32> to vector<8x8x1xf32>
    %82 = vector.shape_cast %81 : vector<8x8x1xf32> to vector<64x1xf32>
    %83 = arith.mulf %82, %50 : vector<64x1xf32>
    %84 = arith.mulf %66, %83 : vector<64x1xf32>
    %85 = arith.subf %51, %84 : vector<64x1xf32>
    %86 = vector.broadcast %83 : vector<64x1xf32> to vector<64x128xf32>
    %87 = arith.mulf %49, %86 : vector<64x128xf32>
    %88 = vector.broadcast %85 : vector<64x1xf32> to vector<64x128xf32>
    %89 = arith.addf %87, %88 : vector<64x128xf32>
    %cst_34 = arith.constant 0.000000e+00 : f32
    %90 = vector.broadcast %cst_34 : f32 to vector<64x128xf32>
    %91 = arith.subf %90, %89 : vector<64x128xf32>
    %92 = math.exp %91 : vector<64x128xf32>
    %cst_35 = arith.constant 1.000000e+00 : f32
    %93 = vector.broadcast %cst_35 : f32 to vector<64x128xf32>
    %94 = arith.addf %93, %92 : vector<64x128xf32>
    %95 = tpu.reciprocal %94 {approx = true} : vector<64x128xf32> -> vector<64x128xf32>
    %96 = arith.mulf %89, %95 : vector<64x128xf32>
    %c0_36 = arith.constant 0 : index
    %c0_37 = arith.constant 0 : index
    %97 = vector.load %arg8[%c0_36, %c0_37] : memref<64x64xbf16, #tpu.memory_space<vmem>>, vector<64x64xbf16>
    %98 = arith.truncf %96 : vector<64x128xf32> to vector<64x128xbf16>
    %cst_38 = arith.constant dense<0.000000e+00> : vector<64x128xf32>
    %99 = tpu.matmul %97, %98, %cst_38 {dimension_numbers = #tpu.dot_dimension_numbers<[1], [0], [0], [1], [0, 0, 1, 1], [], []>} : vector<64x64xbf16>, vector<64x128xbf16>, vector<64x128xf32> -> vector<64x128xf32>
    %100 = arith.addf %46, %99 : vector<64x128xf32>
    %c0_39 = arith.constant 0 : index
    %c0_40 = arith.constant 0 : index
    %101 = vector.load %arg9[%c0_39, %c0_40] : memref<64x1xf32, #tpu.memory_space<vmem>>, vector<64x1xf32>
    %102 = vector.broadcast %101 : vector<64x1xf32> to vector<64x128xf32>
    %103 = arith.addf %100, %102 : vector<64x128xf32>
    %c0_41 = arith.constant 0 : index
    %c0_42 = arith.constant 0 : index
    %c0_43 = arith.constant 0 : index
    %104 = vector.load %arg11[%c0_41, %c0_42, %c0_43] : memref<1x64x128xf32, #tpu.memory_space<vmem>>, vector<1x64x128xf32>
    %105 = vector.shape_cast %104 : vector<1x64x128xf32> to vector<64x128xf32>
    %106 = vector.shape_cast %103 : vector<64x128xf32> to vector<1x64x128xf32>
    tpu.vector_store %arg11[%c0_41, %c0_42, %c0_43], %106 {strides = array<i32>} : memref<1x64x128xf32, #tpu.memory_space<vmem>>, vector<1x64x128xf32>,
    return
  }
  func.func @transform_0(%arg0: i32) -> (i32, i32, i32) {
    %c0_i32 = arith.constant 0 : i32
    %c0_i32_0 = arith.constant 0 : i32
    %c0_i32_1 = arith.constant 0 : i32
    return %arg0, %c0_i32, %c0_i32_0 : i32, i32, i32
  }
  func.func @transform_1(%arg0: i32) -> (i32, i32) {
    %c0_i32 = arith.constant 0 : i32
    %c0_i32_0 = arith.constant 0 : i32
    %c0_i32_1 = arith.constant 0 : i32
    return %c0_i32, %c0_i32_0 : i32, i32
  }
  func.func @transform_2(%arg0: i32) -> (i32, i32) {
    %c0_i32 = arith.constant 0 : i32
    %c0_i32_0 = arith.constant 0 : i32
    %c0_i32_1 = arith.constant 0 : i32
    return %c0_i32, %c0_i32_0 : i32, i32
  }
  func.func @transform_3(%arg0: i32) -> (i32, i32) {
    %c0_i32 = arith.constant 0 : i32
    %c0_i32_0 = arith.constant 0 : i32
    %c0_i32_1 = arith.constant 0 : i32
    return %c0_i32, %c0_i32_0 : i32, i32
  }
  func.func @transform_4(%arg0: i32) -> (i32, i32) {
    %c0_i32 = arith.constant 0 : i32
    %c0_i32_0 = arith.constant 0 : i32
    %c0_i32_1 = arith.constant 0 : i32
    return %c0_i32, %c0_i32_0 : i32, i32
  }
  func.func @transform_5(%arg0: i32) -> (i32, i32) {
    %c0_i32 = arith.constant 0 : i32
    %c0_i32_0 = arith.constant 0 : i32
    %c0_i32_1 = arith.constant 0 : i32
    return %c0_i32, %c0_i32_0 : i32, i32
  }
  func.func @transform_6(%arg0: i32) -> (i32, i32) {
    %c0_i32 = arith.constant 0 : i32
    %c0_i32_0 = arith.constant 0 : i32
    %c0_i32_1 = arith.constant 0 : i32
    return %c0_i32, %c0_i32_0 : i32, i32
  }
  func.func @transform_7(%arg0: i32) -> (i32, i32) {
    %c0_i32 = arith.constant 0 : i32
    %c0_i32_0 = arith.constant 0 : i32
    %c0_i32_1 = arith.constant 0 : i32
    return %c0_i32, %c0_i32_0 : i32, i32
  }
  func.func @transform_8(%arg0: i32) -> (i32, i32) {
    %c0_i32 = arith.constant 0 : i32
    %c0_i32_0 = arith.constant 0 : i32
    %c0_i32_1 = arith.constant 0 : i32
    return %c0_i32, %c0_i32_0 : i32, i32
  }
  func.func @transform_9(%arg0: i32) -> (i32, i32) {
    %c0_i32 = arith.constant 0 : i32
    %c0_i32_0 = arith.constant 0 : i32
    %c0_i32_1 = arith.constant 0 : i32
    return %c0_i32, %c0_i32_0 : i32, i32
  }
  func.func @transform_10(%arg0: i32) -> (i32, i32, i32) {
    %c0_i32 = arith.constant 0 : i32
    %c0_i32_0 = arith.constant 0 : i32
    %c0_i32_1 = arith.constant 0 : i32
    return %arg0, %c0_i32, %c0_i32_0 : i32, i32, i32
  }
}

</mosaic_0001>

<bundles_post_ra>
// kernel: tpu_custom_call.1
= control target key start
LH: loop header
LB: loop body
LE: loop exit
PB: predicated region body
PF: predicated region fallthrough
CT: control target
= control target key end

     0   :  { %s3525_s0 = inlined_call_operand.hbm [shape: f32[2,32,128], index: 0, kind: input, shape index: {}]   ;;  %s3526_s1 = inlined_call_operand.hbm [shape: f32[32,1], index: 1, kind: input, shape index: {}]   ;;  %s3527_s2 = inlined_call_operand.hbm [shape: f32[32,1], index: 2, kind: input, shape index: {}]   ;;  %s3528_s3 = inlined_call_operand.hbm [shape: bf16[64,32], index: 3, kind: input, shape index: {}]   ;;  %s3529_s4 = inlined_call_operand.hbm [shape: f32[64,1], index: 4, kind: input, shape index: {}]   ;;  %s3530_s5 = inlined_call_operand.hbm [shape: f32[64,1], index: 5, kind: input, shape index: {}]   ;;  %s3531_s6 = inlined_call_operand.hbm [shape: f32[64,1], index: 6, kind: input, shape index: {}]   ;;  %s3532_s7 = inlined_call_operand.hbm [shape: bf16[64,64], index: 7, kind: input, shape index: {}]   ;;  %s3533_s8 = inlined_call_operand.hbm [shape: f32[64,1], index: 8, kind: input, shape index: {}]   ;;  %s3534_s9 = inlined_call_operand.hbm [shape: bf16[64,32], index: 9, kind: input, shape index: {}]   ;;  %s3535_s10 = inlined_call_operand.hbm [shape: f32[2,64,128], index: 10, kind: output, shape index: {}]  }
   0x1   :  { %3547 = sst [smem:[#allocation28_spill]] %s3526_s1 }
   0x2   :  { %3548 = sst [smem:[#allocation29_spill]] %s3528_s3 }
   0x3   :  { %3549 = sst [smem:[#allocation30_spill]] %s3530_s5 }
   0x4   :  { %3550 = sst [smem:[#allocation31_spill]] %s3535_s10 }
   0x5   :  { %15 = vsyncpa [#allocation3], 0 }
   0x6   :  { %17 = vsyncpa [#allocation3 + $0x1], 0 }
   0x7   :  { %18 = vsyncpa [#allocation6], 0 }
   0x8   :  { %19 = vsyncpa [#allocation9], 0 }
   0x9   :  { %20 = vsyncpa [#allocation12], 0 }
   0xa   :  { %21 = vsyncpa [#allocation15], 0 }
   0xb   :  { %22 = vsyncpa [#allocation18], 0 }
   0xc   :  { %23 = vsyncpa [#allocation4], 0 }
   0xd   :  { %25 = vsyncpa [#allocation4 + $0x1], 0  ;;  %s2879_s13 = smov 0   ;;  %s2881_s14 = smov 0  }
   0xe   :  { %s2883_s15 = smov 0   ;;  %s2885_s16 = smov 0  }
   0xf LB: > { %s2804_s17 = smov [#allocation5]   ;;  %s2900_s19 = sadd.s32 4294967295, %s2802_s16   ;;  %s2802_s16 = sphi %s2885_s16, %s3585_s16   ;;  %s2798_s15 = sphi %s2883_s15, %s3584_s15   ;;  %s2794_s14 = sphi %s2881_s14, %s3583_s14   ;;  %s2790_s13 = sphi %s2879_s13, %s3582_s13  }
  0x10   : > { %s289_s18 = sshll.u32 %s2804_s17, 4  ;;  %p2061_p0 = scmp.ge.s32.totalorder %s2802_s16, 1  ;;  %s2905_s18 = int_to_ptr.vmem [resolvable:$true] %s289_s18 }
  0x11   : > { %p3540_p1 = scmp.eq.s32.totalorder %s2900_s19, 0  ;;  %p277_p2 = scmp.lt.s32.totalorder %s2802_s16, 3 }
  0x12   : > { %s2805_s21 = smov [#allocation8]   ;;  %s2806_s24 = smov [#allocation11]  }
  0x13   : > { %p2907_p3 = pnand %p2061_p0, %p277_p2  ;;  %s315_s22 = sshll.u32 %s2805_s21, 4  ;;  %s2920_s22 = int_to_ptr.vmem [resolvable:$true] %s315_s22 }
  0x14   : > { %s2922_s25 = sshll.u32 %s2806_s24, 4  ;;  %s3554_s1 = sld [smem:[#allocation28_spill]]  ;;  %s342_s25 = int_to_ptr.vmem [resolvable:$true] %s2922_s25 }
  0x15   : > { %s3551_s20 = scalar_select %p2907_p3, 1, 0 }
  0x16   : > { %p2226_p5 = pneg %p2907_p3 }
  0x17   : > { %3552 = sst [smem:[#allocation27_spill]] %s3551_s20 }
  0x18   : > { %p2916_p6 = pnand %p2226_p5, %p3540_p1 }
  0x1a   : > { %s2434_s28 = scalar_lea.hbm %s3554_s1, 512  ;;  %p2932_p8 = pneg %p2916_p6 }
  0x1b   : > { %p2435_p7 = scmp.ne.s32.totalorder %s3554_s1, %s2434_s28  ;;  %p2441_p11 = scmp.lt.u32.totalorder %s2434_s28, %s3554_s1 }
  0x1d   : > { %p2437_p9 = pnand %p2932_p8, %p2435_p7 }
  0x1f   : > { %p2438_p10 = pneg %p2437_p9 }
  0x21   : > { %p2443_p12 = pnand %p2441_p11, %p2438_p10 }
  0x23   : > { %2446 = shalt.err (!%p2443_p12)
}
  0x24   : > { %s2447_s21 = scalar_lea.vmem %s2905_s18, 512  ;;  %p2455_p5 = scmp.lt.s32.totalorder %s2905_s18, %s2905_s18 }
  0x25   : > { %p2448_p13 = scmp.ne.s32.totalorder %s2905_s18, %s2447_s21  ;;  %p2456_p4 = scmp.lt.s32.totalorder %s2447_s21, %s2447_s21 }
  0x27   : > { %p2450_p0 = pnand %p2448_p13, %p2932_p8  ;;  %p2457_p7 = por %p2456_p4, %p2455_p5 }
  0x29   : > { %p2451_p2 = pneg %p2450_p0 }
  0x2b   : > { %p2458_p9 = pnand %p2457_p7, %p2451_p2 }
  0x2d   : > { %2461 = shalt.err (!%p2458_p9)
}
  0x2e   : > { %s3538_s24 = smov 128   ;;  %s2808_s26 = smov 8  }
  0x2f   : > { %2229 = dma.hbm_to_vmem [thread:$0]  (!%p2916_p6), %s3554_s1, 512, %s2905_s18, [#allocation6], %s3538_s24, %s3538_s24, %s2808_s26  }
  0x30   : > { %s3556_s3 = sld [smem:[#allocation29_spill]] }
  0x36   : > { %s2462_s12 = scalar_lea.hbm %s3556_s3, 512 }
  0x37   : > { %p2463_p4 = scmp.ne.s32.totalorder %s3556_s3, %s2462_s12  ;;  %p2469_p12 = scmp.lt.u32.totalorder %s2462_s12, %s3556_s3 }
  0x39   : > { %p2465_p10 = pnand %p2463_p4, %p2932_p8 }
  0x3b   : > { %p2466_p11 = pneg %p2465_p10 }
  0x3d   : > { %p2471_p13 = pnand %p2469_p12, %p2466_p11 }
  0x3f   : > { %2474 = shalt.err (!%p2471_p13)
}
  0x40   : > { %s2475_s18 = scalar_lea.vmem %s2920_s22, 512  ;;  %p2483_p7 = scmp.lt.s32.totalorder %s2920_s22, %s2920_s22 }
  0x41   : > { %p2476_p0 = scmp.ne.s32.totalorder %s2920_s22, %s2475_s18  ;;  %p2484_p9 = scmp.lt.s32.totalorder %s2475_s18, %s2475_s18 }
  0x43   : > { %p2478_p2 = pnand %p2476_p0, %p2932_p8  ;;  %p2485_p4 = por %p2484_p9, %p2483_p7 }
  0x45   : > { %p2479_p5 = pneg %p2478_p2 }
  0x47   : > { %p2486_p10 = pnand %p2485_p4, %p2479_p5 }
  0x49   : > { %2489 = shalt.err (!%p2486_p10)
}
  0x4a   : > { %s3542_s27 = smov 64   ;;  %s3544_s10 = smov 4  }
  0x4b   : > { %2235 = dma.hbm_to_vmem [thread:$0]  (!%p2916_p6), %s3556_s3, 512, %s2920_s22, [#allocation9], %s3542_s27, %s3542_s27, %s3544_s10  }
  0x4c   : > { %s3557_s5 = sld [smem:[#allocation30_spill]] }
  0x52   : > { %s2490_s12 = scalar_lea.hbm %s3557_s5, 1024 }
  0x53   : > { %p2491_p11 = scmp.ne.s32.totalorder %s3557_s5, %s2490_s12  ;;  %p2497_p0 = scmp.lt.u32.totalorder %s2490_s12, %s3557_s5 }
  0x55   : > { %p2493_p12 = pnand %p2491_p11, %p2932_p8 }
  0x57   : > { %p2494_p13 = pneg %p2493_p12 }
  0x59   : > { %p2499_p2 = pnand %p2497_p0, %p2494_p13 }
  0x5b   : > { %2502 = shalt.err (!%p2499_p2)
}
  0x5c   : > { %s2503_s20 = scalar_lea.vmem %s342_s25, 1024  ;;  %p2511_p4 = scmp.lt.s32.totalorder %s342_s25, %s342_s25 }
  0x5d   : > { %p2504_p5 = scmp.ne.s32.totalorder %s342_s25, %s2503_s20  ;;  %p2512_p10 = scmp.lt.s32.totalorder %s2503_s20, %s2503_s20 }
  0x5f   : > { %p2506_p7 = pnand %p2504_p5, %p2932_p8  ;;  %p2513_p1 = por %p2512_p10, %p2511_p4 }
  0x61   : > { %p2507_p9 = pneg %p2506_p7 }
  0x63   : > { %p2514_p3 = pnand %p2513_p1, %p2507_p9 }
  0x65   : > { %2517 = shalt.err (!%p2514_p3)
}
  0x66   : > { %s3558_s22 = smov 128   ;;  %s2811_s29 = smov [#allocation14]  }
  0x67   : > { %2241 = dma.hbm_to_vmem [thread:$0]  (!%p2916_p6), %s3557_s5, 1024, %s342_s25, [#allocation12], %s3558_s22, %s3558_s22, %s2808_s26  }
  0x68   : > { %s367_s30 = sshll.u32 %s2811_s29, 4  ;;  %s2812_s12 = smov [#allocation7]   ;;  %s368_s30 = int_to_ptr.vmem [resolvable:$true] %s367_s30 }
  0x69   : > { %s302_s17 = sshll.u32 %s2812_s12, 4  ;;  %s2518_s20 = scalar_lea.hbm %s3532_s7, 512  ;;  %s303_s17 = int_to_ptr.vmem [resolvable:$true] %s302_s17 }
  0x6a   : > { %p2519_p1 = scmp.ne.s32.totalorder %s3532_s7, %s2518_s20  ;;  %p2525_p12 = scmp.lt.u32.totalorder %s2518_s20, %s3532_s7 }
  0x6c   : > { %p2521_p3 = pnand %p2519_p1, %p2932_p8 }
  0x6e   : > { %p2522_p11 = pneg %p2521_p3 }
  0x70   : > { %p2527_p13 = pnand %p2525_p12, %p2522_p11 }
  0x72   : > { %2530 = shalt.err (!%p2527_p13)
}
  0x73   : > { %s2531_s25 = scalar_lea.vmem %s368_s30, 512  ;;  %p2539_p7 = scmp.lt.s32.totalorder %s368_s30, %s368_s30 }
  0x74   : > { %p2532_p0 = scmp.ne.s32.totalorder %s368_s30, %s2531_s25  ;;  %p2540_p9 = scmp.lt.s32.totalorder %s2531_s25, %s2531_s25 }
  0x76   : > { %p2534_p2 = pnand %p2532_p0, %p2932_p8  ;;  %p2541_p4 = por %p2540_p9, %p2539_p7 }
  0x78   : > { %p2535_p5 = pneg %p2534_p2 }
  0x7a   : > { %p2542_p10 = pnand %p2541_p4, %p2535_p5 }
  0x7c   : > { %2545 = shalt.err (!%p2542_p10)
}
  0x7d   : > { %s3559_s27 = smov 4   ;;  %s3560_s10 = smov 64  }
  0x7e   : > { %2247 = dma.hbm_to_vmem [thread:$0]  (!%p2916_p6), %s3532_s7, 512, %s368_s30, [#allocation15], %s3560_s10, %s3560_s10, %s3559_s27  }
  0x7f   : > { %s2546_s21 = scalar_lea.hbm %s3527_s2, 512 }
  0x80   : > { %p2547_p1 = scmp.ne.s32.totalorder %s3527_s2, %s2546_s21  ;;  %p2553_p12 = scmp.lt.u32.totalorder %s2546_s21, %s3527_s2 }
  0x82   : > { %p2549_p3 = pnand %p2547_p1, %p2932_p8 }
  0x84   : > { %p2550_p11 = pneg %p2549_p3 }
  0x86   : > { %p2555_p13 = pnand %p2553_p12, %p2550_p11 }
  0x88   : > { %2558 = shalt.err (!%p2555_p13)
}
  0x89   : > { %s2559_s1 = scalar_lea.vmem %s303_s17, 512  ;;  %p2567_p7 = scmp.lt.s32.totalorder %s303_s17, %s303_s17 }
  0x8a   : > { %p2560_p0 = scmp.ne.s32.totalorder %s303_s17, %s2559_s1  ;;  %p2568_p9 = scmp.lt.s32.totalorder %s2559_s1, %s2559_s1 }
  0x8c   : > { %p2562_p2 = pnand %p2560_p0, %p2932_p8  ;;  %p2569_p4 = por %p2568_p9, %p2567_p7 }
  0x8e   : > { %p2563_p5 = pneg %p2562_p2 }
  0x90   : > { %p2570_p10 = pnand %p2569_p4, %p2563_p5 }
  0x92   : > { %2573 = shalt.err (!%p2570_p10)
}
  0x93   : > { %2232 = dma.hbm_to_vmem [thread:$0]  (!%p2916_p6), %s3527_s2, 512, %s303_s17, [#allocation6], %s3558_s22, %s3558_s22, %s2808_s26  }
  0x94   : > { %s2813_s29 = smov [#allocation10]   ;;  %s2814_s21 = smov [#allocation13]  }
  0x95   : > { %s328_s12 = sshll.u32 %s2813_s29, 4  ;;  %s354_s18 = sshll.u32 %s2814_s21, 4  ;;  %s329_s12 = int_to_ptr.vmem [resolvable:$true] %s328_s12  ;;  %s355_s18 = int_to_ptr.vmem [resolvable:$true] %s354_s18 }
  0x96   : > { %s2574_s25 = scalar_lea.hbm %s3529_s4, 1024 }
  0x97   : > { %p2575_p1 = scmp.ne.s32.totalorder %s3529_s4, %s2574_s25  ;;  %p2581_p12 = scmp.lt.u32.totalorder %s2574_s25, %s3529_s4 }
  0x99   : > { %p2577_p3 = pnand %p2575_p1, %p2932_p8 }
  0x9b   : > { %p2578_p11 = pneg %p2577_p3 }
  0x9d   : > { %p2583_p13 = pnand %p2581_p12, %p2578_p11 }
  0x9f   : > { %2586 = shalt.err (!%p2583_p13)
}
  0xa0   : > { %s2587_s17 = scalar_lea.vmem %s329_s12, 1024  ;;  %p2595_p7 = scmp.lt.s32.totalorder %s329_s12, %s329_s12 }
  0xa1   : > { %p2588_p0 = scmp.ne.s32.totalorder %s329_s12, %s2587_s17  ;;  %p2596_p9 = scmp.lt.s32.totalorder %s2587_s17, %s2587_s17 }
  0xa3   : > { %p2590_p2 = pnand %p2588_p0, %p2932_p8  ;;  %p2597_p4 = por %p2596_p9, %p2595_p7 }
  0xa5   : > { %p2591_p5 = pneg %p2590_p2 }
  0xa7   : > { %p2598_p10 = pnand %p2597_p4, %p2591_p5 }
  0xa9   : > { %2601 = shalt.err (!%p2598_p10)
}
  0xaa   : > { %2238 = dma.hbm_to_vmem [thread:$0]  (!%p2916_p6), %s3529_s4, 1024, %s329_s12, [#allocation9], %s3558_s22, %s3558_s22, %s2808_s26  }
  0xab   : > { %s2602_s21 = scalar_lea.hbm %s3531_s6, 1024 }
  0xac   : > { %p2603_p1 = scmp.ne.s32.totalorder %s3531_s6, %s2602_s21  ;;  %p2609_p12 = scmp.lt.u32.totalorder %s2602_s21, %s3531_s6 }
  0xae   : > { %p2605_p3 = pnand %p2603_p1, %p2932_p8 }
  0xb0   : > { %p2606_p11 = pneg %p2605_p3 }
  0xb2   : > { %p2611_p13 = pnand %p2609_p12, %p2606_p11 }
  0xb4   : > { %2614 = shalt.err (!%p2611_p13)
}
  0xb5   : > { %s2615_s30 = scalar_lea.vmem %s355_s18, 1024  ;;  %p2623_p7 = scmp.lt.s32.totalorder %s355_s18, %s355_s18 }
  0xb6   : > { %p2616_p0 = scmp.ne.s32.totalorder %s355_s18, %s2615_s30  ;;  %p2624_p9 = scmp.lt.s32.totalorder %s2615_s30, %s2615_s30 }
  0xb8   : > { %p2618_p2 = pnand %p2616_p0, %p2932_p8  ;;  %p2625_p4 = por %p2624_p9, %p2623_p7 }
  0xba   : > { %p2619_p5 = pneg %p2618_p2 }
  0xbc   : > { %p2626_p10 = pnand %p2625_p4, %p2619_p5 }
  0xbe   : > { %2629 = shalt.err (!%p2626_p10)
}
  0xbf   : > { %2244 = dma.hbm_to_vmem [thread:$0]  (!%p2916_p6), %s3531_s6, 1024, %s355_s18, [#allocation12], %s3558_s22, %s3558_s22, %s2808_s26  }
  0xc0   : > { %s2815_s3 = smov [#allocation16]   ;;  %s2816_s28 = smov [#allocation17]  }
  0xc1   : > { %s380_s5 = sshll.u32 %s2815_s3, 4  ;;  %s393_s29 = sshll.u32 %s2816_s28, 4  ;;  %s381_s5 = int_to_ptr.vmem [resolvable:$true] %s380_s5  ;;  %s394_s29 = int_to_ptr.vmem [resolvable:$true] %s393_s29 }
  0xc2   : > { %s2630_s24 = scalar_lea.hbm %s3533_s8, 1024 }
  0xc3   : > { %p2631_p1 = scmp.ne.s32.totalorder %s3533_s8, %s2630_s24  ;;  %p2637_p12 = scmp.lt.u32.totalorder %s2630_s24, %s3533_s8 }
  0xc5   : > { %p2633_p3 = pnand %p2631_p1, %p2932_p8 }
  0xc7   : > { %p2634_p11 = pneg %p2633_p3 }
  0xc9   : > { %p2639_p13 = pnand %p2637_p12, %p2634_p11 }
  0xcb   : > { %2642 = shalt.err (!%p2639_p13)
}
  0xcc   : > { %s2643_s18 = scalar_lea.vmem %s381_s5, 1024  ;;  %p2651_p7 = scmp.lt.s32.totalorder %s381_s5, %s381_s5 }
  0xcd   : > { %p2644_p0 = scmp.ne.s32.totalorder %s381_s5, %s2643_s18  ;;  %p2652_p9 = scmp.lt.s32.totalorder %s2643_s18, %s2643_s18 }
  0xcf   : > { %p2646_p2 = pnand %p2644_p0, %p2932_p8  ;;  %p2653_p4 = por %p2652_p9, %p2651_p7 }
  0xd1   : > { %p2647_p5 = pneg %p2646_p2 }
  0xd3   : > { %p2654_p10 = pnand %p2653_p4, %p2647_p5 }
  0xd5   : > { %2657 = shalt.err (!%p2654_p10)
}
  0xd6   : > { %2250 = dma.hbm_to_vmem [thread:$0]  (!%p2916_p6), %s3533_s8, 1024, %s381_s5, [#allocation15], %s3558_s22, %s3558_s22, %s2808_s26  }
  0xd7   : > { %s2658_s20 = scalar_lea.hbm %s3534_s9, 512 }
  0xd8   : > { %p2659_p1 = scmp.ne.s32.totalorder %s3534_s9, %s2658_s20  ;;  %p2665_p12 = scmp.lt.u32.totalorder %s2658_s20, %s3534_s9 }
  0xda   : > { %p2661_p3 = pnand %p2659_p1, %p2932_p8 }
  0xdc   : > { %p2662_p11 = pneg %p2661_p3 }
  0xde   : > { %p2667_p13 = pnand %p2665_p12, %p2662_p11 }
  0xe0   : > { %2670 = shalt.err (!%p2667_p13)
}
  0xe1   : > { %s2671_s12 = scalar_lea.vmem %s394_s29, 512  ;;  %p2679_p7 = scmp.lt.s32.totalorder %s394_s29, %s394_s29 }
  0xe2   : > { %p2672_p0 = scmp.ne.s32.totalorder %s394_s29, %s2671_s12  ;;  %p2680_p9 = scmp.lt.s32.totalorder %s2671_s12, %s2671_s12 }
  0xe4   : > { %p2674_p2 = pnand %p2672_p0, %p2932_p8  ;;  %p2681_p4 = por %p2680_p9, %p2679_p7 }
  0xe6   : > { %p2675_p5 = pneg %p2674_p2 }
  0xe8   : > { %p2682_p10 = pnand %p2681_p4, %p2675_p5 }
  0xea   : > { %2685 = shalt.err (!%p2682_p10)
}
  0xeb   : > { %2253 = dma.hbm_to_vmem [thread:$0]  (!%p2916_p6), %s3534_s9, 512, %s394_s29, [#allocation18], %s3560_s10, %s3560_s10, %s3559_s27  }
  0xec   : > { %s2060_s23 = sadd.s32 4294967294, %s2802_s16   ;;  %s3132_s11 = sadd.s32 1, %s2802_s16  }
  0xed   : > { %s38_s17 = sadd.s32 1, %s2798_s15  ;;  %s35_s3 = ssub.s32 %s2802_s16, %s3132_s11 }
  0xee   : > { %p45_p8 = scmp.ne.s32.totalorder %s2798_s15, %s2794_s14  ;;  %p36_p1 = scmp.eq.s32.totalorder %s35_s3, 0 }
  0xef   : > { %p46_p3 = scmp.eq.s32.totalorder %s2802_s16, 0  ;;  %p51_p11 = scmp.ne.s32.totalorder %s2794_s14, %s2790_s13 }
  0xf0   : > { %p264_p12 = scmp.eq.s32.totalorder %s2900_s19, 1  ;;  %p3561_p0 = scmp.eq.s32.totalorder %s2900_s19, 0 }
  0xf1   : > { %s3144_s28 = scalar_select %p36_p1, %s2798_s15, %s38_s17  }
  0xf2   : > { %p47_p13 = por %p46_p3, %p45_p8  ;;  %p3148_p2 = por %p3561_p0, %p51_p11 }
  0xf3   : > { %p3152_p6 = por %p264_p12, %p45_p8  ;;  %p270_p5 = scmp.eq.s32.totalorder %s2060_s23, 1 }
  0xf4   : > { %p2271_p7 = scmp.lt.s32.totalorder %s2802_s16, 2  ;;  %s407_s10 = sand.u32 1, %s2798_s15  }
  0xf5   : > { %s3563_s27 = scalar_select %p3152_p6, 1, 0 }
  0xf6   : > { %p3158_p9 = por %p270_p5, %p51_p11  ;;  %s2072_s20 = sshll.u32 %s407_s10, 5 }
  0xf7   : > { %s2116_s24 = sshll.u32 %s2802_s16, 9  ;;  %s411_s12 = scalar_lea.vmem [#allocation2], %s2072_s20 }
  0xf8   : > { %s3564_s29 = scalar_select %p3158_p9, 1, 0 }
  0xf9   : > { %s3166_s30 = scalar_lea.hbm %s3525_s0, %s2116_s24  ;;  %s418_s5 = sshll.u32 %s411_s12, 4  ;;  %s3172_s5 = int_to_ptr.vmem [resolvable:$true] %s418_s5 }
  0xfa   : > { %p3168_p4 = pnand %p2271_p7, %p47_p13  ;;  %s3174_s23 = scalar_lea.sflag [#allocation3], %s407_s10 }
  0xfb   : > { %s2686_s17 = scalar_lea.hbm %s3166_s30, 512  ;;  %s2691_s24 = scalar_lea.hbm %s3525_s0, 1024 }
  0xfc   : > { %p2687_p10 = scmp.ne.s32.totalorder %s3166_s30, %s2686_s17  ;;  %p2688_p8 = pneg %p3168_p4 }
  0xfd   : > { %p2692_p11 = scmp.lt.u32.totalorder %s3166_s30, %s3525_s0  ;;  %p2693_p12 = scmp.lt.u32.totalorder %s2691_s24, %s2686_s17 }
  0xfe   : > { %p2689_p1 = pnand %p2688_p8, %p2687_p10  ;;  %p2695_p0 = scmp.lt.u32.totalorder %s2686_s17, %s3166_s30 }
  0xff   : > { %p2694_p13 = por %p2693_p12, %p2692_p11 }
 0x100   : > { %p2690_p3 = pneg %p2689_p1 }
 0x101   : > { %p2696_p5 = por %p2695_p0, %p2694_p13 }
 0x103   : > { %p2697_p7 = pnand %p2696_p5, %p2690_p3 }
 0x105   : > { %2700 = shalt.err (!%p2697_p7)
}
 0x106   : > { %s2701_s10 = scalar_lea.vmem %s3172_s5, 512  ;;  %s2817_s12 = smov [#allocation2]  }
 0x107   : > { %p2702_p10 = scmp.ne.s32.totalorder %s3172_s5, %s2701_s10  ;;  %s2706_s3 = sshll.u32 %s2817_s12, 4  ;;  %s2707_s3 = int_to_ptr.vmem [resolvable:$false] %s2706_s3 }
 0x108   : > { %s2708_s20 = scalar_lea.vmem %s2707_s3, 1024  ;;  %p2709_p6 = scmp.lt.s32.totalorder %s3172_s5, %s2707_s3 }
 0x109   : > { %p2704_p1 = pnand %p2702_p10, %p2688_p8  ;;  %p2710_p11 = scmp.lt.s32.totalorder %s2708_s20, %s2701_s10 }
 0x10b   : > { %p2705_p9 = pneg %p2704_p1  ;;  %p2711_p12 = por %p2710_p11, %p2709_p6 }
 0x10d   : > { %p2712_p13 = pnand %p2711_p12, %p2705_p9 }
 0x10f   : > { %2715 = shalt.err (!%p2712_p13)
}
 0x110   : > { %2257 = dma.hbm_to_vmem [thread:$0]  (!%p3168_p4), %s3166_s30, 512, %s3172_s5, %s3174_s23, %s3558_s22, %s3558_s22, %s2808_s26  }
 0x111   : > { %s3566_s17 = sld [smem:[#allocation27_spill]] }
 0x117   : > { %p3567_p8 = scmp.ne.s32.totalorder %s3566_s17, 0 }
 0x118   : > { %s3208_s24 = sand.u32 (!%p3567_p8), 1, %s2794_s14  }
 0x119   : > { %430 = sbr.rel (%p3567_p8) target bundleno = 1964 (0x7ac), region = 60  ;;  %s2076_s25 = sshll.u32 (!%p3567_p8), %s3208_s24, 5 }
 0x11a   : > { %s433_s1 = scalar_lea.sflag (!%p3567_p8), [#allocation3], %s3208_s24  ;;  %s3212_s10 = scalar_lea.vmem (!%p3567_p8), [#allocation2], %s2076_s25 }
 0x120   : > { %2761 = dma.done.wait (%p3148_p2), %s433_s1, 512  }
 0x121   : > { %2763 = vsyncadd (%p3148_p2), %s433_s1, 4294966784  ;;  %p3568_p6 = scmp.eq.s32.totalorder %s2900_s19, 0 }
 0x123   : > { %2765 = dma.done.wait (%p3568_p6), [#allocation6], 1024   ;;  %p3569_p9 = pmov %p3568_p6 }
 0x124   : > { %p3570_p4 = pmov %p3568_p6 }
 0x125   : > { %2767 = vsyncadd (%p3569_p9), [#allocation6], 4294966272 }
 0x126   : > { %2769 = dma.done.wait (%p3570_p4), [#allocation9], 1536   ;;  %p3571_p3 = pmov %p3570_p4 }
 0x128   : > { %2771 = vsyncadd (%p3571_p3), [#allocation9], 4294965760  ;;  %p3572_p0 = pmov %p3571_p3 }
 0x12a   : > { %2773 = dma.done.wait (%p3572_p0), [#allocation12], 2048   ;;  %p3573_p5 = pmov %p3572_p0 }
 0x12b   : > { %p3574_p2 = pmov %p3572_p0 }
 0x12c   : > { %2775 = vsyncadd (%p3573_p5), [#allocation12], 4294965248 }
 0x12d   : > { %2777 = dma.done.wait (%p3574_p2), [#allocation15], 1536   ;;  %p3575_p7 = pmov %p3572_p0 }
 0x12e   : > { %p3576_p10 = pmov %p3572_p0 }
 0x12f   : > { %2779 = vsyncadd (%p3575_p7), [#allocation15], 4294965760 }
 0x130   : > { %2781 = dma.done.wait (%p3576_p10), [#allocation18], 512   ;;  %p3577_p1 = pmov %p3572_p0 }
 0x131   : > { %v3239_v0 = vld [vmem:[%s3212_s10] sm:$0xff]  ;;  %v3242_v1 = vld [vmem:[%s3212_s10 + $0x10] sm:$0xff]  ;;  %v3245_v2 = vld [vmem:[%s3212_s10 + $0x8] sm:$0xff]  ;;  %v2818_v4 = vmov 839922192   ;;  %v537_v6 = vlaneseq  ;;  %vm598_vm0 = vcmask 1043456  }
 0x132   : > { %2783 = vsyncadd (%p3577_p1), [#allocation18], 4294966784  ;;  %522 = vadd.xlane.f32.xlu0 %v3239_v0  ;;  %526 = vadd.xlane.f32.xlu1 %v3242_v1  ;;  %v3250_v3 = vld [vmem:[%s3212_s10 + $0x18] sm:$0xff]  ;;  %v535_v5 = vunpack.c.l.s4 %v2818_v4  ;;  %v2819_v7 = vmov 1985246804   ;;  %vm1096_vm1 = vcmask 261120  }
 0x133   : > { %v542_v8 = vunpack.c.l.s4 %v2819_v7  ;;  %v538_v10 = vshrl.u32 %v537_v6, 7  ;;  %vm1230_vm2 = vcmask 7168   ;;  %vm1648_vm3 = vcmask 523264   ;;  %s2086_s26 = sshll.u32 %s3208_s24, 6  ;;  %s2117_s30 = sshll.u32 %s2900_s19, 10 }
 0x134   : > { %v536_v9 = vunpack.c.0.s8 %v535_v5  ;;  %s508_s22 = scalar_lea.vmem [#allocation19], %s2086_s26  ;;  %s3578_s23 = sld [smem:[#allocation31_spill]] }
 0x135   : > { %v543_v11 = vunpack.c.0.s8 %v542_v8  ;;  %s1901_s21 = sshll.u32 %s508_s22, 4  ;;  %s1888_s19 = scalar_lea.sflag [#allocation4], %s3208_s24  ;;  %s3476_s21 = int_to_ptr.vmem [resolvable:$true] %s1901_s21 }
 0x136   : > { %524 = vadd.xlane.f32.xlu0 %v3245_v2  ;;  %528 = vadd.xlane.f32.xlu1 %v3250_v3  ;;  %v3254_v12 = vsub.s32 %v536_v9, %v538_v10  ;;  %s2716_s3 = scalar_lea.vmem %s3476_s21, 1024  ;;  %p3579_p12 = scmp.ne.s32.totalorder %s3563_s27, 0 }
 0x137   : > { %v3256_v13 = vsub.s32 %v543_v11, %v538_v10  ;;  %p2717_p11 = scmp.ne.s32.totalorder %s3476_s21, %s2716_s3  ;;  %s2821_s20 = smov [#allocation19]  }
 0x138   : > { %s2720_s17 = sshll.u32 %s2821_s20, 4  ;;  %s2721_s17 = int_to_ptr.vmem [resolvable:$false] %s2720_s17 }
 0x139   : > { %p2718_p13 = pnand %p2717_p11, %p3579_p12  ;;  %s2722_s25 = scalar_lea.vmem %s2721_s17, 2048 }
 0x13a   : > { %s3481_s12 = scalar_lea.hbm %s3578_s23, %s2117_s30  ;;  %p2723_p6 = scmp.lt.s32.totalorder %s3476_s21, %s2721_s17 }
 0x13b   : > { %p2719_p8 = pneg %p2718_p13  ;;  %p2724_p9 = scmp.lt.s32.totalorder %s2722_s25, %s2716_s3 }
 0x13d   : > { %p2725_p4 = por %p2724_p9, %p2723_p6 }
 0x13f   : > { %p2726_p3 = pnand %p2725_p4, %p2719_p8 }
 0x1bf   : > { %v523_v14 = vpop.xlane.xlu0 %522  ;;  %v527_v15 = vpop.xlane.xlu1 %526 }
 0x1c0   : > { %v540_v16 = vrot.slane %v523_v14, %v3254_v12  ;;  %v547_v17 = vrot.slane %v523_v14, %v3256_v13  ;;  %v568_v18 = vrot.slane %v527_v15, %v3254_v12  ;;  %v575_v19 = vrot.slane %v527_v15, %v3256_v13 }
 0x1c2   : > { %v599_v20 = vsel %vm598_vm0, %v540_v16, 0.0  ;;  %v606_v21 = vsel %vm598_vm0, %v547_v17, 0.0  ;;  %v627_v22 = vsel %vm598_vm0, %v568_v18, 0.0  ;;  %v634_v23 = vsel %vm598_vm0, %v575_v19, 0.0 }
 0x1c3   : > { %v600_v24 = vrot.slane %v599_v20, 4  ;;  %v607_v25 = vrot.slane %v606_v21, 4  ;;  %v628_v26 = vrot.slane %v627_v22, 4  ;;  %v635_v27 = vrot.slane %v634_v23, 4  ;;  %v525_v28 = vpop.xlane.xlu0 %524  ;;  %v529_v29 = vpop.xlane.xlu1 %528 }
 0x1c4   : > { %v554_v30 = vrot.slane %v525_v28, %v3254_v12  ;;  %v561_v31 = vrot.slane %v525_v28, %v3256_v13  ;;  %v582_v32 = vrot.slane %v529_v29, %v3254_v12  ;;  %v589_v33 = vrot.slane %v529_v29, %v3256_v13 }
 0x1c5   : > { %v601_v34 = vadd.f32 %v600_v24, %v599_v20  ;;  %v608_v35 = vadd.f32 %v607_v25, %v606_v21  ;;  %v629_v36 = vadd.f32 %v628_v26, %v627_v22  ;;  %v636_v37 = vadd.f32 %v635_v27, %v634_v23 }
 0x1c6   : > { %v613_v38 = vsel %vm598_vm0, %v554_v30, 0.0  ;;  %v620_v39 = vsel %vm598_vm0, %v561_v31, 0.0  ;;  %v641_v40 = vsel %vm598_vm0, %v582_v32, 0.0  ;;  %v648_v41 = vsel %vm598_vm0, %v589_v33, 0.0 }
 0x1c7   : > { %v602_v42 = vrot.slane %v601_v34, 2  ;;  %v609_v43 = vrot.slane %v608_v35, 2  ;;  %v630_v44 = vrot.slane %v629_v36, 2  ;;  %v637_v45 = vrot.slane %v636_v37, 2 }
 0x1c8   : > { %v614_v46 = vrot.slane %v613_v38, 4  ;;  %v621_v47 = vrot.slane %v620_v39, 4  ;;  %v642_v48 = vrot.slane %v641_v40, 4  ;;  %v649_v49 = vrot.slane %v648_v41, 4 }
 0x1c9   : > { %v603_v50 = vadd.f32 %v602_v42, %v601_v34  ;;  %v610_v51 = vadd.f32 %v609_v43, %v608_v35  ;;  %v631_v52 = vadd.f32 %v630_v44, %v629_v36  ;;  %v638_v53 = vadd.f32 %v637_v45, %v636_v37 }
 0x1ca   : > { %v615_v54 = vadd.f32 %v614_v46, %v613_v38  ;;  %v622_v55 = vadd.f32 %v621_v47, %v620_v39  ;;  %v643_v56 = vadd.f32 %v642_v48, %v641_v40  ;;  %v650_v57 = vadd.f32 %v649_v49, %v648_v41 }
 0x1cb   : > { %v604_v58 = vrot.slane %v603_v50, 1  ;;  %v611_v59 = vrot.slane %v610_v51, 1  ;;  %v632_v60 = vrot.slane %v631_v52, 1  ;;  %v639_v61 = vrot.slane %v638_v53, 1 }
 0x1cc   : > { %v616_v62 = vrot.slane %v615_v54, 2  ;;  %v623_v63 = vrot.slane %v622_v55, 2  ;;  %v644_v4 = vrot.slane %v643_v56, 2  ;;  %v651_v5 = vrot.slane %v650_v57, 2 }
 0x1cd   : > { %v605_v6 = vadd.f32 %v604_v58, %v603_v50  ;;  %v612_v7 = vadd.f32 %v611_v59, %v610_v51  ;;  %v633_v8 = vadd.f32 %v632_v60, %v631_v52  ;;  %v640_v9 = vadd.f32 %v639_v61, %v638_v53 }
 0x1ce   : > { %v617_v10 = vadd.f32 %v616_v62, %v615_v54  ;;  %v624_v11 = vadd.f32 %v623_v63, %v622_v55  ;;  %v645_v14 = vadd.f32 %v644_v4, %v643_v56  ;;  %v652_v15 = vadd.f32 %v651_v5, %v650_v57 }
 0x1cf   : > { %v3274_v16 = vmul.f32 0.001953125, %v605_v6  ;;  %v3276_v17 = vmul.f32 0.001953125, %v612_v7  ;;  %v3278_v18 = vmul.f32 0.001953125, %v633_v8  ;;  %v3280_v19 = vmul.f32 0.001953125, %v640_v9 }
 0x1d0   : > { %v618_v20 = vrot.slane %v617_v10, 1  ;;  %v625_v21 = vrot.slane %v624_v11, 1  ;;  %v646_v22 = vrot.slane %v645_v14, 1  ;;  %v653_v23 = vrot.slane %v652_v15, 1 }
 0x1d1   : > { %v672_v24 = vcombine.low %v3274_v16, %v3276_v17  ;;  %v674_v25 = vcombine.low %v3278_v18, %v3280_v19  ;;  %v2820_v44 = vmov 0  }
 0x1d2   : > { %v619_v26 = vadd.f32 %v618_v20, %v617_v10  ;;  %v626_v27 = vadd.f32 %v625_v21, %v624_v11  ;;  %v647_v28 = vadd.f32 %v646_v22, %v645_v14  ;;  %v654_v29 = vadd.f32 %v653_v23, %v652_v15  ;;  %2333 = vset.pattern.permute.xlu1 %v2820_v44 }
 0x1d3   : > { %v680_v30 = vsub.f32 %v3239_v0, %v672_v24  ;;  %v682_v31 = vsub.f32 %v3242_v1, %v674_v25  ;;  %2332 = vset.pattern.permute.xlu0 %v2820_v44 }
 0x1d4   : > { %v3288_v32 = vmul.f32 0.001953125, %v619_v26  ;;  %v3290_v33 = vmul.f32 0.001953125, %v626_v27  ;;  %v3292_v34 = vmul.f32 0.001953125, %v647_v28  ;;  %v3294_v35 = vmul.f32 0.001953125, %v654_v29 }
 0x1d5   : > { %v684_v36 = vmul.f32 %v680_v30, %v680_v30  ;;  %v686_v39 = vmul.f32 %v682_v31, %v682_v31 }
 0x1d6   : > { %v673_v37 = vcombine.low %v3288_v32, %v3290_v33  ;;  %v675_v38 = vcombine.low %v3292_v34, %v3294_v35 }
 0x1d7   : > { %688 = vadd.xlane.f32.xlu0 %v684_v36 }
 0x1d8   : > { %v681_v40 = vsub.f32 %v3245_v2, %v673_v37  ;;  %v683_v41 = vsub.f32 %v3250_v3, %v675_v38 }
 0x1da   : > { %v685_v42 = vmul.f32 %v681_v40, %v681_v40  ;;  %v687_v43 = vmul.f32 %v683_v41, %v683_v41 }
 0x1db   : > { %692 = vadd.xlane.f32.xlu0 %v686_v39 }
 0x1dc   : > { %690 = vadd.xlane.f32.xlu1 %v685_v42 }
 0x1e0   : > { %694 = vadd.xlane.f32.xlu1 %v687_v43 }
 0x264   : > { %v689_v45 = vpop.xlane.xlu0 %688 }
 0x265   : > { %v706_v46 = vrot.slane %v689_v45, %v3254_v12  ;;  %v713_v47 = vrot.slane %v689_v45, %v3256_v13 }
 0x267   : > { %v764_v48 = vsel %vm598_vm0, %v706_v46, 0.0  ;;  %v771_v49 = vsel %vm598_vm0, %v713_v47, 0.0 }
 0x268   : > { %v765_v50 = vrot.slane %v764_v48, 4  ;;  %v772_v51 = vrot.slane %v771_v49, 4  ;;  %v693_v52 = vpop.xlane.xlu0 %692 }
 0x269   : > { %v691_v53 = vpop.xlane.xlu1 %690  ;;  %v734_v54 = vrot.slane %v693_v52, %v3254_v12  ;;  %v741_v55 = vrot.slane %v693_v52, %v3256_v13 }
 0x26a   : > { %v766_v56 = vadd.f32 %v765_v50, %v764_v48  ;;  %v773_v57 = vadd.f32 %v772_v51, %v771_v49  ;;  %v720_v58 = vrot.slane %v691_v53, %v3254_v12  ;;  %v727_v59 = vrot.slane %v691_v53, %v3256_v13 }
 0x26b   : > { %v792_v60 = vsel %vm598_vm0, %v734_v54, 0.0  ;;  %v799_v61 = vsel %vm598_vm0, %v741_v55, 0.0 }
 0x26c   : > { %v767_v62 = vrot.slane %v766_v56, 2  ;;  %v774_v63 = vrot.slane %v773_v57, 2  ;;  %v778_v4 = vsel %vm598_vm0, %v720_v58, 0.0  ;;  %v785_v5 = vsel %vm598_vm0, %v727_v59, 0.0 }
 0x26d   : > { %v779_v6 = vrot.slane %v778_v4, 4  ;;  %v786_v7 = vrot.slane %v785_v5, 4  ;;  %v793_v8 = vrot.slane %v792_v60, 4  ;;  %v800_v9 = vrot.slane %v799_v61, 4  ;;  %v695_v10 = vpop.xlane.xlu1 %694 }
 0x26e   : > { %v768_v11 = vadd.f32 %v767_v62, %v766_v56  ;;  %v775_v14 = vadd.f32 %v774_v63, %v773_v57  ;;  %v748_v15 = vrot.slane %v695_v10, %v3254_v12  ;;  %v755_v20 = vrot.slane %v695_v10, %v3256_v13 }
 0x26f   : > { %v780_v21 = vadd.f32 %v779_v6, %v778_v4  ;;  %v787_v22 = vadd.f32 %v786_v7, %v785_v5  ;;  %v794_v23 = vadd.f32 %v793_v8, %v792_v60  ;;  %v801_v24 = vadd.f32 %v800_v9, %v799_v61 }
 0x270   : > { %v769_v25 = vrot.slane %v768_v11, 1  ;;  %v776_v26 = vrot.slane %v775_v14, 1  ;;  %v806_v27 = vsel %vm598_vm0, %v748_v15, 0.0  ;;  %v813_v28 = vsel %vm598_vm0, %v755_v20, 0.0 }
 0x271   : > { %v781_v29 = vrot.slane %v780_v21, 2  ;;  %v788_v30 = vrot.slane %v787_v22, 2  ;;  %v795_v31 = vrot.slane %v794_v23, 2  ;;  %v802_v36 = vrot.slane %v801_v24, 2 }
 0x272   : > { %v770_v37 = vadd.f32 %v769_v25, %v768_v11  ;;  %v777_v38 = vadd.f32 %v776_v26, %v775_v14  ;;  %v807_v39 = vrot.slane %v806_v27, 4  ;;  %v814_v40 = vrot.slane %v813_v28, 4  ;;  %v514_v14 = vld [vmem:[#allocation5] sm:$0xff]  ;;  %v515_v26 = vld [vmem:[#allocation5 + $0x8] sm:$0xff] }
 0x273   : > { %v782_v41 = vadd.f32 %v781_v29, %v780_v21  ;;  %v789_v13 = vadd.f32 %v788_v30, %v787_v22  ;;  %v796_v42 = vadd.f32 %v795_v31, %v794_v23  ;;  %v803_v43 = vadd.f32 %v802_v36, %v801_v24 }
 0x274   : > { %v820_v44 = vmul.f32 0.001953125, %v770_v37  ;;  %v821_v45 = vmul.f32 0.001953125, %v777_v38  ;;  %v808_v46 = vadd.f32 %v807_v39, %v806_v27  ;;  %v815_v47 = vadd.f32 %v814_v40, %v813_v28  ;;  %v517_v37 = vld [vmem:[#allocation5 + $0x18] sm:$0xff] }
 0x275   : > { %v783_v48 = vrot.slane %v782_v41, 1  ;;  %v790_v49 = vrot.slane %v789_v13, 1  ;;  %v797_v50 = vrot.slane %v796_v42, 1  ;;  %v804_v58 = vrot.slane %v803_v43, 1 }
 0x276   : > { %v828_v51 = vadd.f32 1e-06, %v820_v44  ;;  %v829_v52 = vadd.f32 1e-06, %v821_v45  ;;  %v809_v53 = vrot.slane %v808_v46, 2  ;;  %v816_v54 = vrot.slane %v815_v47, 2 }
 0x277   : > { %v784_v55 = vadd.f32 %v783_v48, %v782_v41  ;;  %v791_v56 = vadd.f32 %v790_v49, %v789_v13  ;;  %v798_v57 = vadd.f32 %v797_v50, %v796_v42  ;;  %v805_v8 = vadd.f32 %v804_v58, %v803_v43  ;;  %v519_v45 = vld [vmem:[#allocation7 + $0x8] sm:$0xff]  ;;  %v516_v48 = vld [vmem:[#allocation5 + $0x10] sm:$0xff] }
 0x278   : > { %2350 = vrsqrt.f32 %v828_v51  ;;  %v810_v59 = vadd.f32 %v809_v53, %v808_v46  ;;  %v817_v60 = vadd.f32 %v816_v54, %v815_v47  ;;  %v848_v24 = vcombine.high %v514_v14, %v514_v14 }
 0x279   : > { %2352 = vrsqrt.f32 %v829_v52  ;;  %v822_v61 = vmul.f32 0.001953125, %v784_v55  ;;  %v823_v62 = vmul.f32 0.001953125, %v791_v56  ;;  %v824_v63 = vmul.f32 0.001953125, %v798_v57  ;;  %v521_v56 = vld [vmem:[#allocation7 + $0x18] sm:$0xff] }
 0x27a   : > { %v811_v4 = vrot.slane %v810_v59, 1  ;;  %v818_v5 = vrot.slane %v817_v60, 1  ;;  %v825_v21 = vmul.f32 0.001953125, %v805_v8  ;;  %v849_v31 = vcombine.high %v515_v26, %v515_v26 }
 0x27b   : > { %v830_v6 = vadd.f32 1e-06, %v822_v61  ;;  %v831_v7 = vadd.f32 1e-06, %v823_v62  ;;  %v832_v11 = vadd.f32 1e-06, %v824_v63  ;;  %v851_v13 = vcombine.high %v517_v37, %v517_v37 }
 0x27c   : > { %v812_v9 = vadd.f32 %v811_v4, %v810_v59  ;;  %v819_v10 = vadd.f32 %v818_v5, %v817_v60  ;;  %v833_v28 = vadd.f32 1e-06, %v825_v21  ;;  %v518_v62 = vld [vmem:[#allocation7] sm:$0xff]  ;;  %v520_v5 = vld [vmem:[#allocation7 + $0x10] sm:$0xff] }
 0x27d   : > { %2354 = vrsqrt.f32 %v830_v6 }
 0x27e   : > { %2356 = vrsqrt.f32 %v831_v7  ;;  %v826_v15 = vmul.f32 0.001953125, %v812_v9  ;;  %v827_v20 = vmul.f32 0.001953125, %v819_v10  ;;  %v2338_v7 = vld [vmem:[#allocation8] sm:$0xff]  }
 0x27f   : > { %2358 = vrsqrt.f32 %v832_v11  ;;  %2142 = vmatprep.mubr.msk.bf16.mxu0 %vm1096_vm1, %v2338_v7 }
 0x280   : > { %v834_v22 = vadd.f32 1e-06, %v826_v15  ;;  %v835_v23 = vadd.f32 1e-06, %v827_v20 }
 0x282   : > { %v2351_v25 = vpop.eup %2350  ;;  %2360 = vrsqrt.f32 %v834_v22 }
 0x283   : > { %v2353_v27 = vpop.eup %2352  ;;  %2362 = vrsqrt.f32 %v835_v23  ;;  %v856_v29 = vmul.f32 %v2351_v25, %v514_v14 }
 0x284   : > { %v857_v30 = vmul.f32 %v2353_v27, %v848_v24  ;;  %2364 = vrsqrt.f32 %v833_v28 }
 0x285   : > { %894 = vperm.xlu0 %2332, %v856_v29   ;;  %v864_v60 = vmul.f32 %v856_v29, %v3274_v16 }
 0x286   : > { %906 = vperm.xlu1 %2333, %v857_v30   ;;  %v865_v59 = vmul.f32 %v857_v30, %v3276_v17 }
 0x287   : > { %v2355_v36 = vpop.eup %2354 }
 0x288   : > { %v2357_v38 = vpop.eup %2356  ;;  %v858_v39 = vmul.f32 %v2355_v36, %v515_v26 }
 0x289   : > { %v859_v40 = vmul.f32 %v2357_v38, %v849_v31  ;;  %v2359_v42 = vpop.eup %2358 }
 0x28a   : > { %v866_v41 = vmul.f32 %v858_v39, %v3288_v32  ;;  %918 = vperm.xlu1 %2333, %v858_v39   ;;  %v860_v53 = vmul.f32 %v2359_v42, %v516_v48  ;;  %v850_v32 = vcombine.high %v516_v48, %v516_v48 }
 0x28b   : > { %v867_v43 = vmul.f32 %v859_v40, %v3290_v33 }
 0x28c   : > { %v2361_v44 = vpop.eup %2360 }
 0x28d   : > { %v2363_v46 = vpop.eup %2362  ;;  %v881_v47 = vcombine.low %v866_v41, %v867_v43  ;;  %v862_v49 = vmul.f32 %v2361_v44, %v517_v37 }
 0x28e   : > { %930 = vperm.xlu1 %2333, %v859_v40   ;;  %v863_v50 = vmul.f32 %v2363_v46, %v851_v13  ;;  %v2365_v55 = vpop.eup %2364 }
 0x28f   : > { %v889_v51 = vsub.f32 %v519_v45, %v881_v47  ;;  %v870_v52 = vmul.f32 %v862_v49, %v3292_v34  ;;  %v861_v58 = vmul.f32 %v2365_v55, %v850_v32  ;;  %v868_v34 = vmul.f32 %v860_v53, %v3278_v18 }
 0x290   : > { %v871_v54 = vmul.f32 %v863_v50, %v3294_v35  ;;  %v880_v35 = vcombine.low %v864_v60, %v865_v59 }
 0x291   : > { %1015 = vperm.xlu0 %2332, %v889_v51   ;;  %v869_v61 = vmul.f32 %v861_v58, %v3280_v19 }
 0x292   : > { %942 = vperm.xlu1 %2333, %v860_v53   ;;  %v883_v33 = vcombine.low %v870_v52, %v871_v54  ;;  %v888_v63 = vsub.f32 %v518_v62, %v880_v35  ;;  %v2339_v62 = vld [vmem:[#allocation8 + $0x8] sm:$0xff]  }
 0x293   : > { %v882_v4 = vcombine.low %v868_v34, %v869_v61 }
 0x294   : > { %v891_v57 = vsub.f32 %v521_v56, %v883_v33 }
 0x295   : > { %v890_v6 = vsub.f32 %v520_v5, %v882_v4  ;;  %v2341_v4 = vld [vmem:[#allocation8 + $0x18] sm:$0xff]  }
 0x296   : > { %1025 = vperm.xlu0 %2332, %v891_v57   ;;  %954 = vperm.xlu1 %2333, %v861_v58  }
 0x29a   : > { %966 = vperm.xlu1 %2333, %v862_v49  }
 0x29e   : > { %978 = vperm.xlu1 %2333, %v863_v50  }
 0x2a2   : > { %1010 = vperm.xlu1 %2333, %v888_v63   ;;  %v2340_v63 = vld [vmem:[#allocation8 + $0x10] sm:$0xff]  }
 0x2a6   : > { %1020 = vperm.xlu1 %2333, %v890_v6  }
 0x304   : > { %v895_v10 = vpop.permute.xlu0 %894 }
 0x305   : > { %v907_v17 = vpop.permute.xlu1 %906  ;;  %v903_v23 = vrot.slane %v895_v10, %v3254_v12  ;;  %v3368_v10 = vld [vmem:[#allocation10 + $0x8] sm:$0xff] }
 0x306   : > { %v915_v22 = vrot.slane %v907_v17, %v3254_v12 }
 0x308   : > { %v996_v26 = vcombine.low %v903_v23, %v915_v22 }
 0x309   : > { %v919_v16 = vpop.permute.xlu1 %918 }
 0x30a   : > { %v927_v18 = vrot.slane %v919_v16, %v3254_v12  ;;  %v1004_v38 = vmul.f32 %v996_v26, %v3239_v0 }
 0x30d   : > { %v931_v8 = vpop.permute.xlu1 %930 }
 0x30e   : > { %v939_v19 = vrot.slane %v931_v8, %v3254_v12 }
 0x310   : > { %v997_v9 = vcombine.low %v927_v18, %v939_v19  ;;  %v1016_v15 = vpop.permute.xlu0 %1015 }
 0x311   : > { %v943_v11 = vpop.permute.xlu1 %942 }
 0x312   : > { %v1005_v14 = vmul.f32 %v997_v9, %v3245_v2  ;;  %v951_v30 = vrot.slane %v943_v11, %v3254_v12  ;;  %v3366_v9 = vld [vmem:[#allocation10] sm:$0xff] }
 0x313   : > { %v1214_v11 = vmul.f32 128.0, %v3366_v9 }
 0x314   : > { %v1029_v21 = vadd.f32 %v1016_v15, %v1005_v14  ;;  %v3371_v14 = vld [vmem:[#allocation10 + $0x18] sm:$0xff]  ;;  %v1215_v15 = vmul.f32 128.0, %v3368_v10 }
 0x315   : > { %v955_v20 = vpop.permute.xlu1 %954  ;;  %v1026_v13 = vpop.permute.xlu0 %1025  ;;  %v1217_v23 = vmul.f32 128.0, %v3371_v14 }
 0x316   : > { %v1033_v25 = vsub.f32 0.0, %v1029_v21  ;;  %v963_v27 = vrot.slane %v955_v20, %v3254_v12 }
 0x318   : > { %v1038_v29 = vmul.f32 1.442695, %v1033_v25  ;;  %v998_v36 = vcombine.low %v951_v30, %v963_v27  ;;  %v3379_v30 = vld [vmem:[#allocation10 + $0x20] sm:$0xff] }
 0x319   : > { %v967_v24 = vpop.permute.xlu1 %966 }
 0x31a   : > { %v975_v31 = vrot.slane %v967_v24, %v3254_v12  ;;  %2366 = vpow2.f32 %v1038_v29  ;;  %v1006_v44 = vmul.f32 %v998_v36, %v3242_v1 }
 0x31d   : > { %v979_v28 = vpop.permute.xlu1 %978 }
 0x31e   : > { %v987_v2 = vrot.slane %v979_v28, %v3254_v12 }
 0x320   : > { %v999_v37 = vcombine.low %v975_v31, %v987_v2  ;;  %v3381_v31 = vld [vmem:[#allocation10 + $0x28] sm:$0xff] }
 0x321   : > { %v1011_v39 = vpop.permute.xlu1 %1010 }
 0x322   : > { %v1007_v40 = vmul.f32 %v999_v37, %v3250_v3  ;;  %v1028_v41 = vadd.f32 %v1011_v39, %v1004_v38 }
 0x324   : > { %v1031_v42 = vadd.f32 %v1026_v13, %v1007_v40  ;;  %v1032_v43 = vsub.f32 0.0, %v1028_v41  ;;  %v2367_v0 = vpop.eup %2366  ;;  %v1218_v13 = vmul.f32 128.0, %v3379_v30 }
 0x325   : > { %v1021_v45 = vpop.permute.xlu1 %1020  ;;  %v1045_v51 = vadd.f32 1.0, %v2367_v0 }
 0x326   : > { %v1035_v46 = vsub.f32 0.0, %v1031_v42  ;;  %v1036_v47 = vmul.f32 1.442695, %v1032_v43  ;;  %v1030_v48 = vadd.f32 %v1021_v45, %v1006_v44 }
 0x328   : > { %v1042_v49 = vmul.f32 1.442695, %v1035_v46  ;;  %2368 = vpow2.f32 %v1036_v47  ;;  %v1034_v12 = vsub.f32 0.0, %v1030_v48  ;;  %v3387_v46 = vld [vmem:[#allocation10 + $0x30] sm:$0xff]  ;;  %v3389_v47 = vld [vmem:[#allocation10 + $0x38] sm:$0xff] }
 0x32a   : > { %2370 = vpow2.f32 %v1042_v49  ;;  %v1040_v50 = vmul.f32 1.442695, %v1034_v12 }
 0x32c   : > { %2372 = vpow2.f32 %v1040_v50 }
 0x32d   : > { %2374 = vrcp.f32 %v1045_v51 }
 0x332   : > { %v2369_v52 = vpop.eup %2368 }
 0x333   : > { %v1044_v3 = vadd.f32 1.0, %v2369_v52 }
 0x334   : > { %v2371_v53 = vpop.eup %2370 }
 0x335   : > { %v1047_v54 = vadd.f32 1.0, %v2371_v53  ;;  %2376 = vrcp.f32 %v1044_v3 }
 0x336   : > { %v2373_v32 = vpop.eup %2372 }
 0x337   : > { %2378 = vrcp.f32 %v1047_v54  ;;  %v1046_v1 = vadd.f32 1.0, %v2373_v32  ;;  %v2375_v55 = vpop.eup %2374  ;;  %v1220_v54 = vmul.f32 128.0, %v3387_v46  ;;  %v1221_v32 = vmul.f32 128.0, %v3389_v47 }
 0x338   : > { %v1053_v33 = vmul.f32 %v2375_v55, %v1029_v21  ;;  %v3374_v21 = vld [vmem:[#allocation10 + $0x10] sm:$0xff] }
 0x339   : > { %2380 = vrcp.f32 %v1046_v1  ;;  %v1216_v27 = vmul.f32 128.0, %v3374_v21 }
 0x33f   : > { %v2377_v56 = vpop.eup %2376 }
 0x340   : > { %v1052_v57 = vmul.f32 %v2377_v56, %v1028_v41 }
 0x341   : > { %v2379_v58 = vpop.eup %2378 }
 0x342   : > { %v1074_v59 = vpack.c.bf16 %v1053_v33, %v1052_v57  ;;  %v1055_v61 = vmul.f32 %v2379_v58, %v1031_v42  ;;  %v1219_v42 = vmul.f32 128.0, %v3381_v31 }
 0x343   : > { %v2381_v60 = vpop.eup %2380 }
 0x344   : > { %v1054_v34 = vmul.f32 %v2381_v60, %v1030_v48  ;;  %2138 = vmatprep.subr.bf16.mxu0 %v1074_v59 }
 0x345   : > { %2139 = vmatpush3.bf16.msra.mxu0 %v1074_v59 }
 0x346   : > { %v1075_v35 = vpack.c.bf16 %v1055_v61, %v1054_v34 }
 0x348   : > { %2140 = vmatprep.subr.bf16.mxu0 %v1075_v35 }
 0x349   : > { %2141 = vmatpush3.bf16.msra.mxu0 %v1075_v35 }
 0x34c   : > { %2143 = vmatmul.mubr.msk.bf16.vlgmr.msra.gmra.mrb[0].mxu0 %vm1096_vm1, %v2339_v62 }
 0x34d   : > { %2146 = vmatprep.mubr.msk.bf16.mxu0 %vm1096_vm1, %v2340_v63 }
 0x354   : > { %2147 = vmatmul.mubr.msk.bf16.gmra.mrb[4].mxu0 %vm1096_vm1, %v2341_v4 }
 0x41f   : > { %v3342_v5 = vpop.f32.mrb[0].mxu0 }
 0x420   : > { %v3344_v6 = vpop.f32.mrb[1].mxu0 }
 0x421   : > { %1198 = vadd.xlane.f32.xlu1 %v3344_v6  ;;  %v3347_v7 = vpop.f32.mrb[2].mxu0 }
 0x422   : > { %v3349_v17 = vpop.f32.mrb[3].mxu0 }
 0x423   : > { %1200 = vadd.xlane.f32.xlu0 %v3349_v17 }
 0x425   : > { %1204 = vadd.xlane.f32.xlu1 %v3347_v7 }
 0x427   : > { %1202 = vadd.xlane.f32.xlu0 %v3342_v5  ;;  %v3354_v16 = vpop.f32.mrb[4].mxu0 }
 0x428   : > { %v3356_v8 = vpop.f32.mrb[5].mxu0 }
 0x429   : > { %v3358_v18 = vpop.f32.mrb[6].mxu0 }
 0x42a   : > { %v3360_v19 = vpop.f32.mrb[7].mxu0 }
 0x42b   : > { %1206 = vadd.xlane.f32.xlu0 %v3356_v8  ;;  %1208 = vadd.xlane.f32.xlu1 %v3360_v19 }
 0x42f   : > { %1210 = vadd.xlane.f32.xlu0 %v3354_v16  ;;  %1212 = vadd.xlane.f32.xlu1 %v3358_v18 }
 0x4ae   : > { %v1199_v20 = vpop.xlane.xlu1 %1198 }
 0x4af   : > { %v1222_v22 = vadd.f32 %v1214_v11, %v1199_v20 }
 0x4b0   : > { %v1201_v24 = vpop.xlane.xlu0 %1200 }
 0x4b1   : > { %v1231_v25 = vsel %vm1230_vm2, %v1222_v22, 0.0  ;;  %v1223_v26 = vadd.f32 %v1215_v15, %v1201_v24 }
 0x4b2   : > { %v1232_v28 = vrot.slane %v1231_v25, 4  ;;  %v1205_v29 = vpop.xlane.xlu1 %1204 }
 0x4b3   : > { %v1238_v2 = vsel %vm1230_vm2, %v1223_v26, 0.0  ;;  %v1225_v36 = vadd.f32 %v1217_v23, %v1205_v29 }
 0x4b4   : > { %v1233_v37 = vadd.f32 %v1232_v28, %v1231_v25  ;;  %v1239_v38 = vrot.slane %v1238_v2, 4  ;;  %v1203_v39 = vpop.xlane.xlu0 %1202 }
 0x4b5   : > { %v1252_v40 = vsel %vm1230_vm2, %v1225_v36, 0.0  ;;  %v1224_v41 = vadd.f32 %v1216_v27, %v1203_v39 }
 0x4b6   : > { %v1234_v43 = vrot.slane %v1233_v37, 2  ;;  %v1240_v44 = vadd.f32 %v1239_v38, %v1238_v2  ;;  %v1253_v45 = vrot.slane %v1252_v40, 4 }
 0x4b7   : > { %v1245_v48 = vsel %vm1230_vm2, %v1224_v41, 0.0 }
 0x4b8   : > { %v1235_v49 = vadd.f32 %v1234_v43, %v1233_v37  ;;  %v1241_v12 = vrot.slane %v1240_v44, 2  ;;  %v1254_v50 = vadd.f32 %v1253_v45, %v1252_v40  ;;  %v1246_v0 = vrot.slane %v1245_v48, 4  ;;  %v1207_v51 = vpop.xlane.xlu0 %1206  ;;  %v1209_v52 = vpop.xlane.xlu1 %1208 }
 0x4b9   : > { %v1226_v3 = vadd.f32 %v1218_v13, %v1207_v51  ;;  %v1227_v53 = vadd.f32 %v1219_v42, %v1209_v52 }
 0x4ba   : > { %v1236_v1 = vrot.slane %v1235_v49, 1  ;;  %v1242_v55 = vadd.f32 %v1241_v12, %v1240_v44  ;;  %v1255_v56 = vrot.slane %v1254_v50, 2  ;;  %v1247_v33 = vadd.f32 %v1246_v0, %v1245_v48 }
 0x4bb   : > { %v1259_v57 = vsel %vm1230_vm2, %v1226_v3, 0.0  ;;  %v1266_v58 = vsel %vm1230_vm2, %v1227_v53, 0.0 }
 0x4bc   : > { %v1243_v59 = vrot.slane %v1242_v55, 1  ;;  %v1256_v60 = vadd.f32 %v1255_v56, %v1254_v50  ;;  %v1248_v34 = vrot.slane %v1247_v33, 2  ;;  %v1260_v61 = vrot.slane %v1259_v57, 4  ;;  %v1211_v35 = vpop.xlane.xlu0 %1210  ;;  %v1213_v62 = vpop.xlane.xlu1 %1212 }
 0x4bd   : > { %v1267_v63 = vrot.slane %v1266_v58, 4  ;;  %v1228_v4 = vadd.f32 %v1220_v54, %v1211_v35  ;;  %v1229_v11 = vadd.f32 %v1221_v32, %v1213_v62  ;;  %v1237_v15 = vadd.f32 %v1236_v1, %v1235_v49 }
 0x4be   : > { %v1257_v20 = vrot.slane %v1256_v60, 1  ;;  %v1249_v22 = vadd.f32 %v1248_v34, %v1247_v33  ;;  %v1261_v23 = vadd.f32 %v1260_v61, %v1259_v57  ;;  %v1244_v24 = vadd.f32 %v1243_v59, %v1242_v55 }
 0x4bf   : > { %v1268_v25 = vadd.f32 %v1267_v63, %v1266_v58  ;;  %v1273_v26 = vsel %vm1230_vm2, %v1228_v4, 0.0  ;;  %v1280_v27 = vsel %vm1230_vm2, %v1229_v11, 0.0  ;;  %v1288_v28 = vmul.f32 0.0009765625, %v1237_v15 }
 0x4c0   : > { %v1250_v29 = vrot.slane %v1249_v22, 1  ;;  %v1262_v2 = vrot.slane %v1261_v23, 2  ;;  %v1274_v36 = vrot.slane %v1273_v26, 4  ;;  %v1281_v37 = vrot.slane %v1280_v27, 4 }
 0x4c1   : > { %v1269_v38 = vrot.slane %v1268_v25, 2  ;;  %v3399_v39 = vsub.f32 %v1288_v28, %v3366_v9  ;;  %v1289_v40 = vmul.f32 0.0009765625, %v1244_v24  ;;  %v1258_v41 = vadd.f32 %v1257_v20, %v1256_v60 }
 0x4c2   : > { %v1263_v13 = vadd.f32 %v1262_v2, %v1261_v23  ;;  %v1275_v42 = vadd.f32 %v1274_v36, %v1273_v26  ;;  %v1282_v43 = vadd.f32 %v1281_v37, %v1280_v27  ;;  %v1251_v44 = vadd.f32 %v1250_v29, %v1249_v22 }
 0x4c3   : > { %v1270_v45 = vadd.f32 %v1269_v38, %v1268_v25  ;;  %1306 = vperm.xlu0 %2332, %v3399_v39   ;;  %v3403_v48 = vsub.f32 %v1289_v40, %v3368_v10  ;;  %v1291_v49 = vmul.f32 0.0009765625, %v1258_v41 }
 0x4c4   : > { %v1264_v12 = vrot.slane %v1263_v13, 1  ;;  %v1276_v50 = vrot.slane %v1275_v42, 2  ;;  %v1283_v0 = vrot.slane %v1282_v43, 2  ;;  %v1290_v51 = vmul.f32 0.0009765625, %v1251_v44 }
 0x4c5   : > { %v1271_v52 = vrot.slane %v1270_v45, 1  ;;  %1311 = vperm.xlu1 %2333, %v3403_v48   ;;  %v3407_v9 = vsub.f32 %v1291_v49, %v3371_v14 }
 0x4c6   : > { %v1277_v3 = vadd.f32 %v1276_v50, %v1275_v42  ;;  %v1284_v53 = vadd.f32 %v1283_v0, %v1282_v43  ;;  %v3410_v54 = vsub.f32 %v1290_v51, %v3374_v21  ;;  %v1265_v32 = vadd.f32 %v1264_v12, %v1263_v13 }
 0x4c7   : > { %1321 = vperm.xlu0 %2332, %v3407_v9   ;;  %v1272_v10 = vadd.f32 %v1271_v52, %v1270_v45 }
 0x4c8   : > { %v1278_v1 = vrot.slane %v1277_v3, 1  ;;  %v1285_v55 = vrot.slane %v1284_v53, 1  ;;  %v1292_v56 = vmul.f32 0.0009765625, %v1265_v32 }
 0x4c9   : > { %1316 = vperm.xlu1 %2333, %v3410_v54   ;;  %v1293_v33 = vmul.f32 0.0009765625, %v1272_v10 }
 0x4ca   : > { %v3415_v57 = vsub.f32 %v1292_v56, %v3379_v30  ;;  %v1279_v14 = vadd.f32 %v1278_v1, %v1277_v3  ;;  %v1286_v58 = vadd.f32 %v1285_v55, %v1284_v53 }
 0x4cb   : > { %v3418_v59 = vsub.f32 %v1293_v33, %v3381_v31 }
 0x4cc   : > { %v1294_v21 = vmul.f32 0.0009765625, %v1279_v14  ;;  %v1295_v60 = vmul.f32 0.0009765625, %v1286_v58 }
 0x4cd   : > { %1326 = vperm.xlu1 %2333, %v3415_v57   ;;  %1331 = vperm.xlu0 %2332, %v3418_v59  }
 0x4ce   : > { %v3423_v34 = vsub.f32 %v1294_v21, %v3387_v46  ;;  %v3426_v61 = vsub.f32 %v1295_v60, %v3389_v47 }
 0x4d1   : > { %1336 = vperm.xlu1 %2333, %v3423_v34   ;;  %1341 = vperm.xlu0 %2332, %v3426_v61  }
 0x542   : > { %v1307_v30 = vpop.permute.xlu0 %1306 }
 0x543   : > { %v1344_v31 = vsub.f32 %v3344_v6, %v1307_v30 }
 0x544   : > { %v1312_v35 = vpop.permute.xlu1 %1311 }
 0x545   : > { %v1352_v62 = vmul.f32 %v1344_v31, %v1344_v31  ;;  %v1345_v63 = vsub.f32 %v3349_v17, %v1312_v35 }
 0x546   : > { %v1322_v4 = vpop.permute.xlu0 %1321 }
 0x547   : > { %v1353_v11 = vmul.f32 %v1345_v63, %v1345_v63  ;;  %v1347_v15 = vsub.f32 %v3347_v7, %v1322_v4  ;;  %1360 = vadd.xlane.f32.xlu1 %v1352_v62 }
 0x548   : > { %v1317_v46 = vpop.permute.xlu1 %1316 }
 0x549   : > { %v1355_v20 = vmul.f32 %v1347_v15, %v1347_v15  ;;  %v1346_v47 = vsub.f32 %v3342_v5, %v1317_v46  ;;  %1362 = vadd.xlane.f32.xlu0 %v1353_v11 }
 0x54b   : > { %v1354_v22 = vmul.f32 %v1346_v47, %v1346_v47  ;;  %1366 = vadd.xlane.f32.xlu1 %v1355_v20 }
 0x54c   : > { %v1332_v23 = vpop.permute.xlu0 %1331  ;;  %v1327_v24 = vpop.permute.xlu1 %1326 }
 0x54d   : > { %v1349_v25 = vsub.f32 %v3360_v19, %v1332_v23  ;;  %v1348_v26 = vsub.f32 %v3356_v8, %v1327_v24  ;;  %1364 = vadd.xlane.f32.xlu0 %v1354_v22 }
 0x54f   : > { %v1357_v27 = vmul.f32 %v1349_v25, %v1349_v25  ;;  %v1356_v28 = vmul.f32 %v1348_v26, %v1348_v26 }
 0x550   : > { %v1342_v29 = vpop.permute.xlu0 %1341  ;;  %v1337_v2 = vpop.permute.xlu1 %1336 }
 0x551   : > { %v1351_v36 = vsub.f32 %v3358_v18, %v1342_v29  ;;  %v1350_v37 = vsub.f32 %v3354_v16, %v1337_v2  ;;  %1370 = vadd.xlane.f32.xlu1 %v1357_v27  ;;  %1368 = vadd.xlane.f32.xlu0 %v1356_v28 }
 0x553   : > { %v1359_v38 = vmul.f32 %v1351_v36, %v1351_v36  ;;  %v1358_v40 = vmul.f32 %v1350_v37, %v1350_v37 }
 0x555   : > { %1374 = vadd.xlane.f32.xlu1 %v1359_v38  ;;  %1372 = vadd.xlane.f32.xlu0 %v1358_v40 }
 0x5d4   : > { %v1361_v41 = vpop.xlane.xlu1 %1360 }
 0x5d5   : > { %v1376_v13 = vrot.slane %v1361_v41, 4 }
 0x5d6   : > { %v1363_v42 = vpop.xlane.xlu0 %1362 }
 0x5d7   : > { %v1377_v43 = vadd.f32 %v1376_v13, %v1361_v41  ;;  %v1382_v44 = vrot.slane %v1363_v42, 4 }
 0x5d8   : > { %v1367_v45 = vpop.xlane.xlu1 %1366 }
 0x5d9   : > { %v1378_v49 = vrot.slane %v1377_v43, 2  ;;  %v1383_v12 = vadd.f32 %v1382_v44, %v1363_v42  ;;  %v1394_v50 = vrot.slane %v1367_v45, 4 }
 0x5da   : > { %v1365_v0 = vpop.xlane.xlu0 %1364 }
 0x5db   : > { %v1379_v51 = vadd.f32 %v1378_v49, %v1377_v43  ;;  %v1384_v52 = vrot.slane %v1383_v12, 2  ;;  %v1395_v3 = vadd.f32 %v1394_v50, %v1367_v45  ;;  %v1388_v53 = vrot.slane %v1365_v0, 4 }
 0x5dd   : > { %v1380_v32 = vrot.slane %v1379_v51, 1  ;;  %v1385_v10 = vadd.f32 %v1384_v52, %v1383_v12  ;;  %v1396_v1 = vrot.slane %v1395_v3, 2  ;;  %v1389_v55 = vadd.f32 %v1388_v53, %v1365_v0 }
 0x5de   : > { %v1369_v56 = vpop.xlane.xlu0 %1368  ;;  %v1371_v33 = vpop.xlane.xlu1 %1370 }
 0x5df   : > { %v1381_v14 = vadd.f32 %v1380_v32, %v1379_v51  ;;  %v1386_v58 = vrot.slane %v1385_v10, 1  ;;  %v1397_v21 = vadd.f32 %v1396_v1, %v1395_v3  ;;  %v1390_v60 = vrot.slane %v1389_v55, 2 }
 0x5e0   : > { %v1400_v30 = vrot.slane %v1369_v56, 4  ;;  %v1406_v31 = vrot.slane %v1371_v33, 4 }
 0x5e1   : > { %v1424_v35 = vmul.f32 0.0009765625, %v1381_v14  ;;  %v1387_v62 = vadd.f32 %v1386_v58, %v1385_v10  ;;  %v1398_v63 = vrot.slane %v1397_v21, 1  ;;  %v1391_v4 = vadd.f32 %v1390_v60, %v1389_v55  ;;  %v1174_v10 = vld [vmem:[#allocation11] sm:$0xff] }
 0x5e2   : > { %v1401_v11 = vadd.f32 %v1400_v30, %v1369_v56  ;;  %v1407_v15 = vadd.f32 %v1406_v31, %v1371_v33  ;;  %v1373_v46 = vpop.xlane.xlu0 %1372  ;;  %v1375_v20 = vpop.xlane.xlu1 %1374  ;;  %v1177_v31 = vld [vmem:[#allocation11 + $0x18] sm:$0xff] }
 0x5e3   : > { %v1432_v47 = vadd.f32 1e-06, %v1424_v35  ;;  %v1425_v22 = vmul.f32 0.0009765625, %v1387_v62  ;;  %v1399_v23 = vadd.f32 %v1398_v63, %v1397_v21  ;;  %v1392_v24 = vrot.slane %v1391_v4, 1  ;;  %v1175_v35 = vld [vmem:[#allocation11 + $0x8] sm:$0xff] }
 0x5e4   : > { %v1402_v25 = vrot.slane %v1401_v11, 2  ;;  %v1408_v26 = vrot.slane %v1407_v15, 2  ;;  %v1412_v27 = vrot.slane %v1373_v46, 4  ;;  %v1418_v28 = vrot.slane %v1375_v20, 4 }
 0x5e5   : > { %2382 = vrsqrt.f32 %v1432_v47  ;;  %v1433_v29 = vadd.f32 1e-06, %v1425_v22  ;;  %v1427_v2 = vmul.f32 0.0009765625, %v1399_v23  ;;  %v1393_v36 = vadd.f32 %v1392_v24, %v1391_v4  ;;  %v1176_v4 = vld [vmem:[#allocation11 + $0x10] sm:$0xff]  ;;  %v1185_v22 = vld [vmem:[#allocation13 + $0x18] sm:$0xff] }
 0x5e6   : > { %v1403_v37 = vadd.f32 %v1402_v25, %v1401_v11  ;;  %v1409_v38 = vadd.f32 %v1408_v26, %v1407_v15  ;;  %v1413_v40 = vadd.f32 %v1412_v27, %v1373_v46  ;;  %v1419_v41 = vadd.f32 %v1418_v28, %v1375_v20  ;;  %v1183_v27 = vld [vmem:[#allocation13 + $0x8] sm:$0xff] }
 0x5e7   : > { %2384 = vrsqrt.f32 %v1433_v29  ;;  %v1435_v13 = vadd.f32 1e-06, %v1427_v2  ;;  %v1426_v42 = vmul.f32 0.0009765625, %v1393_v36  ;;  %v1184_v29 = vld [vmem:[#allocation13 + $0x10] sm:$0xff] }
 0x5e8   : > { %v1404_v43 = vrot.slane %v1403_v37, 1  ;;  %v1410_v44 = vrot.slane %v1409_v38, 1  ;;  %v1414_v45 = vrot.slane %v1413_v40, 2  ;;  %v1420_v49 = vrot.slane %v1419_v41, 2 }
 0x5e9   : > { %2386 = vrsqrt.f32 %v1435_v13  ;;  %v1434_v12 = vadd.f32 1e-06, %v1426_v42  ;;  %v1182_v13 = vld [vmem:[#allocation13] sm:$0xff] }
 0x5ea   : > { %v1411_v50 = vadd.f32 %v1410_v44, %v1409_v38  ;;  %v1415_v0 = vadd.f32 %v1414_v45, %v1413_v40  ;;  %v1421_v51 = vadd.f32 %v1420_v49, %v1419_v41  ;;  %v1405_v52 = vadd.f32 %v1404_v43, %v1403_v37  ;;  %v1181_v37 = vld [vmem:[#allocation11 + $0x38] sm:$0xff]  ;;  %v1179_v38 = vld [vmem:[#allocation11 + $0x28] sm:$0xff]  ;;  %v1178_v49 = vld [vmem:[#allocation11 + $0x20] sm:$0xff] }
 0x5eb   : > { %2388 = vrsqrt.f32 %v1434_v12 }
 0x5ec   : > { %v1429_v3 = vmul.f32 0.0009765625, %v1411_v50  ;;  %v1416_v53 = vrot.slane %v1415_v0, 1  ;;  %v1422_v32 = vrot.slane %v1421_v51, 1  ;;  %v1428_v14 = vmul.f32 0.0009765625, %v1405_v52  ;;  %v1187_v50 = vld [vmem:[#allocation13 + $0x28] sm:$0xff] }
 0x5ee   : > { %v1417_v1 = vadd.f32 %v1416_v53, %v1415_v0  ;;  %v1423_v55 = vadd.f32 %v1422_v32, %v1421_v51  ;;  %v1437_v33 = vadd.f32 1e-06, %v1429_v3  ;;  %v1436_v11 = vadd.f32 1e-06, %v1428_v14  ;;  %v1189_v3 = vld [vmem:[#allocation13 + $0x38] sm:$0xff]  ;;  %v1186_v32 = vld [vmem:[#allocation13 + $0x20] sm:$0xff] }
 0x5ef   : > { %v2383_v56 = vpop.eup %2382  ;;  %v1826_v14 = vld [vmem:[#allocation16 + $0x18] sm:$0xff] }
 0x5f0   : > { %v1431_v58 = vmul.f32 0.0009765625, %v1423_v55  ;;  %v1448_v21 = vmul.f32 %v2383_v56, %v1174_v10  ;;  %v1430_v30 = vmul.f32 0.0009765625, %v1417_v1  ;;  %2390 = vrsqrt.f32 %v1437_v33  ;;  %v1188_v56 = vld [vmem:[#allocation13 + $0x30] sm:$0xff] }
 0x5f1   : > { %v2385_v60 = vpop.eup %2384 }
 0x5f2   : > { %v1439_v62 = vadd.f32 1e-06, %v1431_v58  ;;  %1474 = vperm.xlu0 %2332, %v1448_v21   ;;  %v1449_v46 = vmul.f32 %v2385_v60, %v1175_v35  ;;  %v1438_v47 = vadd.f32 1e-06, %v1430_v30  ;;  %v1828_v58 = vld [vmem:[#allocation16 + $0x28] sm:$0xff]  ;;  %v1829_v60 = vld [vmem:[#allocation16 + $0x30] sm:$0xff] }
 0x5f3   : > { %v2387_v63 = vpop.eup %2386  ;;  %v2430_v30 = vld [vmem:[%s3212_s10] sm:$0xff] }
 0x5f4   : > { %v1451_v15 = vmul.f32 %v2387_v63, %v1177_v31  ;;  %2392 = vrsqrt.f32 %v1439_v62  ;;  %v1457_v26 = vmul.f32 %v1449_v46, %v3403_v48  ;;  %v2431_v31 = vld [vmem:[%s3212_s10 + $0x8] sm:$0xff]  ;;  %v2432_v62 = vld [vmem:[%s3212_s10 + $0x10] sm:$0xff]  ;;  %v2433_v63 = vld [vmem:[%s3212_s10 + $0x18] sm:$0xff] }
 0x5f5   : > { %v2389_v20 = vpop.eup %2388  ;;  %2394 = vrsqrt.f32 %v1436_v11  ;;  %v1064_v35 = vpack.c.bf16 %v2431_v31, %v2430_v30  ;;  %v2342_v11 = vld [vmem:[#allocation17] sm:$0xff]  }
 0x5f6   : > { %1489 = vperm.xlu0 %2332, %v1451_v15   ;;  %v1450_v23 = vmul.f32 %v2389_v20, %v1176_v4  ;;  %v1459_v24 = vmul.f32 %v1451_v15, %v3407_v9  ;;  %2396 = vrsqrt.f32 %v1438_v47  ;;  %v1465_v2 = vsub.f32 %v1183_v27, %v1457_v26  ;;  %v2343_v15 = vld [vmem:[#allocation17 + $0x8] sm:$0xff]   ;;  %2170 = vmatprep.mubr.msk.bf16.mxu1 %vm1096_vm1, %v2342_v11  ;;  %v2346_v20 = vld [vmem:[#allocation17 + $0x10] sm:$0xff]   ;;  %v2347_v47 = vld [vmem:[#allocation17 + $0x18] sm:$0xff]  }
 0x5f7   : > { %v1456_v9 = vmul.f32 %v1448_v21, %v3399_v39  ;;  %v1830_v21 = vld [vmem:[#allocation16 + $0x38] sm:$0xff]  ;;  %2166 = vmatprep.subr.bf16.mxu1 %v1064_v35  ;;  %v1065_v4 = vpack.c.bf16 %v2433_v63, %v2432_v62 }
 0x5f8   : > { %1484 = vperm.xlu1 %2333, %v1450_v23   ;;  %v1467_v25 = vsub.f32 %v1185_v22, %v1459_v24  ;;  %v1458_v28 = vmul.f32 %v1450_v23, %v3410_v54  ;;  %v1180_v54 = vld [vmem:[#allocation11 + $0x30] sm:$0xff]  ;;  %2167 = vmatpush3.bf16.msra.mxu1 %v1064_v35 }
 0x5f9   : > { %v1464_v44 = vsub.f32 %v1182_v13, %v1456_v9  ;;  %2168 = vmatprep.subr.bf16.mxu1 %v1065_v4 }
 0x5fa   : > { %1537 = vperm.xlu0 %2332, %v1467_v25   ;;  %v2391_v36 = vpop.eup %2390  ;;  %v1466_v40 = vsub.f32 %v1184_v29, %v1458_v28 }
 0x5fb   : > { %v1453_v48 = vmul.f32 %v2391_v36, %v1179_v38 }
 0x5fc   : > { %1479 = vperm.xlu1 %2333, %v1449_v46   ;;  %2169 = vmatpush3.bf16.msra.mxu1 %v1065_v4  ;;  %v2344_v46 = vld [vmem:[#allocation14] sm:$0xff]  }
 0x5fd   : > { %v1461_v12 = vmul.f32 %v1453_v48, %v3418_v59  ;;  %v1824_v59 = vld [vmem:[#allocation16 + $0x8] sm:$0xff]  ;;  %2158 = vmatprep.mubr.msk.bf16.mxu0 %vm1648_vm3, %v2344_v46 }
 0x5fe   : > { %1527 = vperm.xlu0 %2332, %v1465_v2   ;;  %v2393_v41 = vpop.eup %2392 }
 0x5ff   : > { %v1455_v42 = vmul.f32 %v2393_v41, %v1181_v37  ;;  %v2395_v43 = vpop.eup %2394  ;;  %v1469_v39 = vsub.f32 %v1187_v50, %v1461_v12  ;;  %2171 = vmatmul.mubr.msk.bf16.vlgmr.msra.gmra.mrb[0].mxu1 %vm1096_vm1, %v2343_v15 }
 0x600   : > { %1532 = vperm.xlu1 %2333, %v1466_v40   ;;  %v2397_v45 = vpop.eup %2396  ;;  %v1452_v51 = vmul.f32 %v2395_v43, %v1178_v49  ;;  %2174 = vmatprep.mubr.msk.bf16.mxu1 %vm1096_vm1, %v2346_v20 }
 0x601   : > { %v1454_v0 = vmul.f32 %v2397_v45, %v1180_v54  ;;  %v1463_v52 = vmul.f32 %v1455_v42, %v3426_v61  ;;  %v1823_v61 = vld [vmem:[#allocation16] sm:$0xff] }
 0x602   : > { %1509 = vperm.xlu0 %2332, %v1455_v42   ;;  %v1460_v53 = vmul.f32 %v1452_v51, %v3415_v57  ;;  %v1825_v57 = vld [vmem:[#allocation16 + $0x10] sm:$0xff] }
 0x603   : > { %v1471_v10 = vsub.f32 %v1189_v3, %v1463_v52  ;;  %v1462_v55 = vmul.f32 %v1454_v0, %v3423_v34  ;;  %v1827_v34 = vld [vmem:[#allocation16 + $0x20] sm:$0xff] }
 0x604   : > { %1522 = vperm.xlu1 %2333, %v1464_v44   ;;  %v1468_v1 = vsub.f32 %v1186_v32, %v1460_v53 }
 0x605   : > { %v1470_v33 = vsub.f32 %v1188_v56, %v1462_v55 }
 0x606   : > { %1499 = vperm.xlu0 %2332, %v1453_v48  }
 0x607   : > { %2175 = vmatmul.mubr.msk.bf16.gmra.mrb[4].mxu1 %vm1096_vm1, %v2347_v47 }
 0x608   : > { %1504 = vperm.xlu1 %2333, %v1454_v0  }
 0x60a   : > { %1547 = vperm.xlu0 %2332, %v1469_v39  }
 0x60c   : > { %1494 = vperm.xlu1 %2333, %v1452_v51  }
 0x60e   : > { %1557 = vperm.xlu0 %2332, %v1471_v10  }
 0x610   : > { %1542 = vperm.xlu1 %2333, %v1468_v1  }
 0x612   : > { %1838 = vperm.xlu0 %2332, %v1824_v59  }
 0x614   : > { %1552 = vperm.xlu1 %2333, %v1470_v33  }
 0x616   : > { %1848 = vperm.xlu0 %2332, %v1826_v14  }
 0x618   : > { %1833 = vperm.xlu1 %2333, %v1823_v61  }
 0x61a   : > { %1858 = vperm.xlu0 %2332, %v1828_v58  }
 0x61c   : > { %1843 = vperm.xlu1 %2333, %v1825_v57  }
 0x61e   : > { %1868 = vperm.xlu0 %2332, %v1830_v21  }
 0x620   : > { %1853 = vperm.xlu1 %2333, %v1827_v34  }
 0x624   : > { %1863 = vperm.xlu1 %2333, %v1829_v60  }
 0x671   : > { %v1475_v22 = vpop.permute.xlu0 %1474 }
 0x672   : > { %v1512_v42 = vmul.f32 %v1475_v22, %v3344_v6 }
 0x675   : > { %v1490_v23 = vpop.permute.xlu0 %1489 }
 0x676   : > { %v1515_v25 = vmul.f32 %v3347_v7, %v1490_v23 }
 0x677   : > { %v1485_v24 = vpop.permute.xlu1 %1484 }
 0x678   : > { %v1514_v37 = vmul.f32 %v3342_v5, %v1485_v24 }
 0x679   : > { %v1538_v26 = vpop.permute.xlu0 %1537 }
 0x67a   : > { %v3456_v27 = vadd.f32 %v1538_v26, %v1515_v25 }
 0x67b   : > { %v1480_v28 = vpop.permute.xlu1 %1479 }
 0x67c   : > { %v1571_v29 = vsub.f32 0.0, %v3456_v27  ;;  %v1513_v2 = vmul.f32 %v1480_v28, %v3349_v17 }
 0x67d   : > { %v1528_v36 = vpop.permute.xlu0 %1527 }
 0x67e   : > { %v1582_v38 = vmul.f32 1.442695, %v1571_v29  ;;  %v3461_v40 = vadd.f32 %v1528_v36, %v1513_v2 }
 0x67f   : > { %v1533_v9 = vpop.permute.xlu1 %1532 }
 0x680   : > { %2398 = vpow2.f32 %v1582_v38  ;;  %v1569_v41 = vsub.f32 0.0, %v3461_v40  ;;  %v1562_v13 = vadd.f32 %v1533_v9, %v1514_v37 }
 0x681   : > { %v1510_v7 = vpop.permute.xlu0 %1509 }
 0x682   : > { %v1578_v48 = vmul.f32 1.442695, %v1569_v41  ;;  %v1570_v43 = vsub.f32 0.0, %v1562_v13  ;;  %v1519_v6 = vmul.f32 %v3358_v18, %v1510_v7 }
 0x683   : > { %v1523_v44 = vpop.permute.xlu1 %1522 }
 0x684   : > { %2400 = vpow2.f32 %v1578_v48  ;;  %v1580_v45 = vmul.f32 1.442695, %v1570_v43  ;;  %v1560_v17 = vadd.f32 %v1523_v44, %v1512_v42  ;;  %v2345_v44 = vld [vmem:[#allocation14 + $0x8] sm:$0xff]  }
 0x685   : > { %v1500_v54 = vpop.permute.xlu0 %1499 }
 0x686   : > { %2402 = vpow2.f32 %v1580_v45  ;;  %v1568_v5 = vsub.f32 0.0, %v1560_v17  ;;  %v1517_v50 = vmul.f32 %v1500_v54, %v3360_v19  ;;  %v2348_v45 = vld [vmem:[#allocation14 + $0x10] sm:$0xff]  }
 0x687   : > { %v1505_v49 = vpop.permute.xlu1 %1504 }
 0x688   : > { %v1576_v12 = vmul.f32 1.442695, %v1568_v5  ;;  %v1518_v57 = vmul.f32 %v3354_v16, %v1505_v49 }
 0x689   : > { %v1548_v0 = vpop.permute.xlu0 %1547 }
 0x68a   : > { %v2399_v51 = vpop.eup %2398  ;;  %2404 = vpow2.f32 %v1576_v12  ;;  %v1565_v39 = vadd.f32 %v1548_v0, %v1517_v50 }
 0x68b   : > { %v1495_v52 = vpop.permute.xlu1 %1494  ;;  %v1595_v53 = vadd.f32 1.0, %v2399_v51 }
 0x68c   : > { %v1573_v3 = vsub.f32 0.0, %v1565_v39  ;;  %v1516_v55 = vmul.f32 %v1495_v52, %v3356_v8 }
 0x68d   : > { %v1558_v32 = vpop.permute.xlu0 %1557 }
 0x68e   : > { %v2401_v10 = vpop.eup %2400  ;;  %v1586_v1 = vmul.f32 1.442695, %v1573_v3  ;;  %v1567_v59 = vadd.f32 %v1558_v32, %v1519_v6 }
 0x68f   : > { %v1543_v56 = vpop.permute.xlu1 %1542  ;;  %v1593_v61 = vadd.f32 1.0, %v2401_v10 }
 0x690   : > { %v2403_v33 = vpop.eup %2402  ;;  %2406 = vpow2.f32 %v1586_v1  ;;  %v1575_v14 = vsub.f32 0.0, %v1567_v59  ;;  %v1564_v19 = vadd.f32 %v1543_v56, %v1516_v55 }
 0x691   : > { %2408 = vrcp.f32 %v1595_v53  ;;  %v1594_v58 = vadd.f32 1.0, %v2403_v33  ;;  %v1839_v6 = vpop.permute.xlu0 %1838 }
 0x692   : > { %v1590_v21 = vmul.f32 1.442695, %v1575_v14  ;;  %v1572_v18 = vsub.f32 0.0, %v1564_v19 }
 0x693   : > { %2410 = vrcp.f32 %v1594_v58  ;;  %v1553_v34 = vpop.permute.xlu1 %1552 }
 0x694   : > { %v2405_v60 = vpop.eup %2404  ;;  %2412 = vpow2.f32 %v1590_v21  ;;  %v1584_v30 = vmul.f32 1.442695, %v1572_v18  ;;  %v1566_v31 = vadd.f32 %v1553_v34, %v1518_v57 }
 0x695   : > { %2414 = vrcp.f32 %v1593_v61  ;;  %v1592_v8 = vadd.f32 1.0, %v2405_v60  ;;  %v1849_v53 = vpop.permute.xlu0 %1848 }
 0x696   : > { %2416 = vpow2.f32 %v1584_v30  ;;  %v1574_v35 = vsub.f32 0.0, %v1566_v31 }
 0x697   : > { %2418 = vrcp.f32 %v1592_v8  ;;  %v1834_v52 = vpop.permute.xlu1 %1833 }
 0x698   : > { %v1588_v62 = vmul.f32 1.442695, %v1574_v35 }
 0x699   : > { %v1859_v21 = vpop.permute.xlu0 %1858 }
 0x69a   : > { %v2407_v63 = vpop.eup %2406  ;;  %2420 = vpow2.f32 %v1588_v62 }
 0x69b   : > { %v2409_v4 = vpop.eup %2408  ;;  %v1597_v15 = vadd.f32 1.0, %v2407_v63  ;;  %v1844_v3 = vpop.permute.xlu1 %1843 }
 0x69c   : > { %v1611_v46 = vmul.f32 %v2409_v4, %v3456_v27 }
 0x69d   : > { %v2411_v11 = vpop.eup %2410  ;;  %2422 = vrcp.f32 %v1597_v15 }
 0x69e   : > { %v2413_v16 = vpop.eup %2412  ;;  %v1610_v20 = vmul.f32 %v2411_v11, %v1562_v13  ;;  %v1869_v11 = vpop.permute.xlu0 %1868 }
 0x69f   : > { %v2415_v47 = vpop.eup %2414  ;;  %v1599_v25 = vadd.f32 1.0, %v2413_v16 }
 0x6a0   : > { %v2417_v22 = vpop.eup %2416  ;;  %v1625_v23 = vpack.c.bf16 %v1611_v46, %v1610_v20  ;;  %v1609_v28 = vmul.f32 %v2415_v47, %v3461_v40 }
 0x6a1   : > { %v2419_v24 = vpop.eup %2418  ;;  %v1596_v26 = vadd.f32 1.0, %v2417_v22 }
 0x6a2   : > { %v1608_v29 = vmul.f32 %v2419_v24, %v1560_v17  ;;  %v2349_v17 = vld [vmem:[#allocation14 + $0x18] sm:$0xff]  }
 0x6a3   : > { %2424 = vrcp.f32 %v1596_v26 }
 0x6a4   : > { %v2421_v2 = vpop.eup %2420  ;;  %v1624_v36 = vpack.c.bf16 %v1609_v28, %v1608_v29  ;;  %2426 = vrcp.f32 %v1599_v25 }
 0x6a5   : > { %v1598_v37 = vadd.f32 1.0, %v2421_v2 }
 0x6a6   : > { %2150 = vmatprep.subr.bf16.mxu0 %v1624_v36 }
 0x6a7   : > { %2428 = vrcp.f32 %v1598_v37  ;;  %2151 = vmatpush3.bf16.msra.mxu0 %v1624_v36  ;;  %v2423_v27 = vpop.eup %2422 }
 0x6a8   : > { %2152 = vmatprep.subr.bf16.mxu0 %v1625_v23  ;;  %v1613_v9 = vmul.f32 %v2423_v27, %v1565_v39 }
 0x6ab   : > { %2153 = vmatpush3.bf16.msra.mxu0 %v1625_v23 }
 0x6ad   : > { %v2425_v38 = vpop.eup %2424 }
 0x6ae   : > { %v1612_v41 = vmul.f32 %v2425_v38, %v1564_v19  ;;  %v2427_v13 = vpop.eup %2426  ;;  %v1854_v19 = vpop.permute.xlu1 %1853 }
 0x6af   : > { %v1615_v48 = vmul.f32 %v2427_v13, %v1567_v59 }
 0x6b0   : > { %v1626_v7 = vpack.c.bf16 %v1613_v9, %v1612_v41 }
 0x6b1   : > { %v2429_v42 = vpop.eup %2428 }
 0x6b2   : > { %v1614_v40 = vmul.f32 %v2429_v42, %v1566_v31  ;;  %2154 = vmatprep.subr.bf16.mxu0 %v1626_v7  ;;  %v1864_v31 = vpop.permute.xlu1 %1863 }
 0x6b3   : > { %2155 = vmatpush3.bf16.msra.mxu0 %v1626_v7 }
 0x6b4   : > { %v1627_v43 = vpack.c.bf16 %v1615_v48, %v1614_v40 }
 0x6b6   : > { %2156 = vmatprep.subr.bf16.mxu0 %v1627_v43 }
 0x6b7   : > { %2157 = vmatpush3.bf16.msra.mxu0 %v1627_v43 }
 0x6ba   : > { %2159 = vmatmul.mubr.msk.bf16.vlgmr.msra.gmra.mrb[8].mxu0 %vm1648_vm3, %v2345_v44 }
 0x6bb   : > { %2162 = vmatprep.mubr.msk.bf16.mxu0 %vm1648_vm3, %v2348_v45 }
 0x6c2   : > { %2163 = vmatmul.mubr.msk.bf16.gmra.mrb[12].mxu0 %vm1648_vm3, %v2349_v17 }
 0x6d2   : > { %v2172_v54 = vpop.f32.mrb[0].mxu1 }
 0x6d3   : > { %v1792_v5 = vpop.f32.mrb[1].mxu1 }
 0x6d4   : > { %v2173_v49 = vpop.f32.mrb[2].mxu1 }
 0x6d5   : > { %v1795_v12 = vpop.f32.mrb[3].mxu1 }
 0x6da   : > { %v2176_v50 = vpop.f32.mrb[4].mxu1 }
 0x6db   : > { %v1808_v0 = vpop.f32.mrb[5].mxu1 }
 0x6dc   : > { %v2177_v51 = vpop.f32.mrb[6].mxu1 }
 0x6dd   : > { %v1811_v39 = vpop.f32.mrb[7].mxu1 }
 0x78d   : > { %v2160_v32 = vpop.f32.mrb[8].mxu0 }
 0x78e   : > { %v1801_v10 = vadd.f32 %v2172_v54, %v2160_v32  ;;  %v1695_v1 = vpop.f32.mrb[9].mxu0 }
 0x78f   : > { %v1793_v55 = vadd.f32 %v1792_v5, %v1695_v1  ;;  %v2161_v59 = vpop.f32.mrb[10].mxu0 }
 0x790   : > { %v1873_v56 = vadd.f32 %v1844_v3, %v1801_v10  ;;  %v1804_v33 = vadd.f32 %v2173_v49, %v2161_v59  ;;  %v1698_v14 = vpop.f32.mrb[11].mxu0 }
 0x791   : > { %v1871_v61 = vadd.f32 %v1834_v52, %v1793_v55  ;;  %v1796_v58 = vadd.f32 %v1795_v12, %v1698_v14 }
 0x792   : > { %1881 = vst [vmem:[%s508_s22 + $0x10] sm:$0xff] %v1873_v56  ;;  %v1874_v57 = vadd.f32 %v1849_v53, %v1804_v33 }
 0x793   : > { %1879 = vst [vmem:[%s508_s22] sm:$0xff] %v1871_v61  ;;  %v1872_v18 = vadd.f32 %v1839_v6, %v1796_v58 }
 0x794   : > { %1882 = vst [vmem:[%s508_s22 + $0x18] sm:$0xff] %v1874_v57 }
 0x795   : > { %1880 = vst [vmem:[%s508_s22 + $0x8] sm:$0xff] %v1872_v18  ;;  %v2164_v34 = vpop.f32.mrb[12].mxu0 }
 0x796   : > { %v1817_v60 = vadd.f32 %v2176_v50, %v2164_v34  ;;  %v1711_v30 = vpop.f32.mrb[13].mxu0 }
 0x797   : > { %v1809_v8 = vadd.f32 %v1808_v0, %v1711_v30  ;;  %v2165_v35 = vpop.f32.mrb[14].mxu0 }
 0x798   : > { %v1877_v62 = vadd.f32 %v1864_v31, %v1817_v60  ;;  %v1820_v63 = vadd.f32 %v2177_v51, %v2165_v35  ;;  %v1714_v4 = vpop.f32.mrb[15].mxu0 }
 0x799   : > { %v1875_v15 = vadd.f32 %v1854_v19, %v1809_v8  ;;  %v1812_v16 = vadd.f32 %v1811_v39, %v1714_v4 }
 0x79a   : > { %1885 = vst [vmem:[%s508_s22 + $0x30] sm:$0xff] %v1877_v62  ;;  %v1878_v46 = vadd.f32 %v1869_v11, %v1820_v63 }
 0x79b   : > { %1883 = vst [vmem:[%s508_s22 + $0x20] sm:$0xff] %v1875_v15  ;;  %v1876_v20 = vadd.f32 %v1859_v21, %v1812_v16 }
 0x79c   : > { %1886 = vst [vmem:[%s508_s22 + $0x38] sm:$0xff] %v1878_v46 }
 0x79d   : > { %1884 = vst [vmem:[%s508_s22 + $0x28] sm:$0xff] %v1876_v20 }
 0x79e   : > { %2729 = shalt.err (!%p2726_p3)
}
 0x79f   : > { %s2730_s1 = scalar_lea.hbm %s3481_s12, 1024  ;;  %s2734_s22 = scalar_lea.hbm %s3578_s23, 2048 }
 0x7a0   : > { %p2731_p0 = scmp.ne.s32.totalorder %s3481_s12, %s2730_s1  ;;  %p2735_p7 = scmp.lt.u32.totalorder %s3481_s12, %s3578_s23 }
 0x7a1   : > { %p2736_p10 = scmp.lt.u32.totalorder %s2734_s22, %s2730_s1  ;;  %p2738_p11 = scmp.lt.u32.totalorder %s2730_s1, %s3481_s12 }
 0x7a2   : > { %p2732_p5 = pnand %p2731_p0, %p3579_p12 }
 0x7a3   : > { %p2737_p1 = por %p2736_p10, %p2735_p7 }
 0x7a4   : > { %p2733_p2 = pneg %p2732_p5 }
 0x7a5   : > { %p2739_p13 = por %p2738_p11, %p2737_p1 }
 0x7a7   : > { %p2740_p8 = pnand %p2739_p13, %p2733_p2 }
 0x7a9   : > { %2743 = shalt.err (!%p2740_p8)
}
 0x7aa   : > { %s2822_s18 = smov 128   ;;  %s2823_s3 = smov 8  }
 0x7ab   : > { %2224 = dma.vmem_to_hbm [thread:$0]  (%p3579_p12), %s3476_s21, 1024, %s3481_s12, %s1888_s19, %s2822_s18, %s2822_s18, %s2823_s3  }
 0x7ac PF: > { %s1916_s20 = sand.u32 1, %s2790_s13   ;;  %p3580_p6 = scmp.ne.s32.totalorder %s3564_s29, 0 }
 0x7ad   : > { %p3581_p9 = scmp.ge.s32.totalorder %s2802_s16, 2  ;;  %s1917_s17 = scalar_lea.sflag [#allocation4], %s1916_s20 }
 0x7af   : > { %p2259_p4 = pnand %p3581_p9, %p3580_p6 }
 0x7b1   : > { %2785 = dma.done.wait (!%p2259_p4), %s1917_s17, 1024  }
 0x7b2   : > { %2787 = vsyncadd (!%p2259_p4), %s1917_s17, 4294966272  ;;  %p28_p3 = scmp.ge.s32.totalorder %s3132_s11, 4   ;;  %s3582_s13 = smov %s2794_s14 }
 0x7b3   : > { %s3583_s14 = smov %s2798_s15  ;;  %s3584_s15 = smov %s3144_s28 }
 0x7b4   : > { %s3585_s16 = smov %s3132_s11  ;;  %30 = sbr.rel (!%p28_p3) target bundleno = 15 (0xf), region = 141 }
 0x7bb   :  { %1922 = vsyncpa [#allocation3], 1 }
 0x7bc   :  { %1924 = vsyncpa [#allocation3 + $0x1], 1 }
 0x7bd   :  { %1925 = vsyncpa [#allocation6], 1 }
 0x7be   :  { %1926 = vsyncpa [#allocation9], 1 }
 0x7bf   :  { %1927 = vsyncpa [#allocation12], 1 }
 0x7c0   :  { %1928 = vsyncpa [#allocation15], 1 }
 0x7c1   :  { %1929 = vsyncpa [#allocation18], 1 }
 0x7c2   :  { %1930 = vsyncpa [#allocation4], 1 }
 0x7c3   :  { %1932 = vsyncpa [#allocation4 + $0x1], 1 }

</bundles_post_ra>
